<compile_context>
chip_gen: v5e
topology: v5e:2x2
jax: 0.10.0
libtpu: 0.0.40
codegen_flags: <defaults>
</compile_context>

<pallas_src>
import functools

import jax
import jax.numpy as jnp
from jax.experimental import pallas as pl
from jax.experimental.pallas import tpu as pltpu


_VMEM = pl.BlockSpec(memory_space=pltpu.MemorySpace.VMEM)
_SMEM = pl.BlockSpec(memory_space=pltpu.MemorySpace.SMEM)
_BF16 = jnp.bfloat16


# ----------------------------------------------------------------------------
# Fused MeeLayer kernel: everything VMEM-resident, single launch, grid=().
# ----------------------------------------------------------------------------
def _mee_fused_kernel(
    betas_ref,        # SMEM (3,)  [stem_beta, branch_beta, keep_beta]
    intra_adj_ref,    # VMEM (H, N, N)   bf16  row-normalized (A+I) per height
    axy_ref,          # VMEM (H-1, N, N) bf16  inter block A[xnodes, ynodes]
    ayx_ref,          # VMEM (H-1, N, N) bf16  inter block A[ynodes, xnodes]
    dxx_ref,          # VMEM (H-1, N, 1) f32   diag of A[xnodes, xnodes]
    dyy_ref,          # VMEM (H-1, N, 1) f32   diag of A[ynodes, ynodes]
    feat_ref,         # VMEM (H, N, D)   f32
    wi_ref,           # VMEM (H, D, D)   bf16  intra conv weights (sharing resolved outside)
    bi_ref,           # VMEM (H, 1, D)   f32   intra conv biases
    wc_ref,           # VMEM (H-1, D, D) bf16  inter conv weights (pre-scaled by cross_beta)
    bc_ref,           # VMEM (H-1, 1, D) f32   inter conv biases  (pre-scaled by cross_beta)
    out_ref,          # VMEM (H, N, D)   f32   -- doubles as the resident working buffer xs
    *,
    height, sh, eh, vertical_first,
):
    stem = betas_ref[0]
    branch = betas_ref[1]
    keep = betas_ref[2]

    # Working buffer lives in out_ref (no separate xs scratch, no extra copy at the end).
    out_ref[...] = feat_ref[...]

    def intra_update(i):
        # conv(g, x) = A_hat @ x @ W + b  (bf16 MXU operands, f32 accumulation)
        x = out_ref[i]
        ax = jnp.dot(intra_adj_ref[i], x.astype(_BF16),
                     preferred_element_type=jnp.float32)
        out_ref[i] = (
            jnp.dot(ax.astype(_BF16), wi_ref[i], preferred_element_type=jnp.float32)
            + bi_ref[i]
        )

    def rightward():
        for i in range(height):
            if sh <= i <= eh:
                intra_update(i)

    def cross_update(i):
        # Fused node order is [x nodes, y nodes] (batch size 1).  The xx/yy blocks of
        # the fused bipartite inter adjacency are diagonal -> VPU row-scale; only the
        # xy/yx blocks hit the MXU.  The DxD weight matmul is shared (reassociation):
        #   new_x = dxx * (x@W) + Axy @ (y@W) + b
        #   new_y = dyy * (y@W) + Ayx @ (x@W) + b
        # cross_beta is already folded into wc/bc host-side.
        x = out_ref[i]
        y = out_ref[i + 1]
        w = wc_ref[i]
        b = bc_ref[i]
        xw = jnp.dot(x.astype(_BF16), w, preferred_element_type=jnp.float32)
        yw = jnp.dot(y.astype(_BF16), w, preferred_element_type=jnp.float32)
        new_x = (
            dxx_ref[i] * xw
            + jnp.dot(axy_ref[i], yw.astype(_BF16), preferred_element_type=jnp.float32)
            + b
        )
        new_y = (
            dyy_ref[i] * yw
            + jnp.dot(ayx_ref[i], xw.astype(_BF16), preferred_element_type=jnp.float32)
            + b
        )
        # fusion_fc is None  =>  keep_beta * old + (cross_beta-folded) new
        out_ref[i] = keep * x + new_x
        out_ref[i + 1] = keep * y + new_y

    def vertical(inds):
        for i in inds:
            if i + 1 >= height:
                continue
            cross_update(i)

    if not vertical_first:
        rightward()

    inds = list(range(sh, eh))
    vertical(inds)
    if len(inds) > 1:
        vertical(inds[::-1])

    if vertical_first:
        rightward()

    # dropout is None => identity.  Residual: stem*original + branch*updated.
    # Padded rows carry only bias values (zero adjacency rows) and padded adjacency
    # COLUMNS are zero, so padding never contaminates real rows; padded rows are
    # sliced off in the wrapper.
    out_ref[...] = stem * feat_ref[...] + branch * out_ref[...]


@functools.partial(
    jax.jit,
    static_argnames=("height", "sh", "eh", "vertical_first", "vmem_limit_bytes"),
)
def _mee_fused_call(betas, intra_adj, axy, ayx, dxx, dyy, feats, wi, bi, wc, bc,
                    *, height, sh, eh, vertical_first, vmem_limit_bytes):
    _, n_max, d = feats.shape
    kernel = functools.partial(
        _mee_fused_kernel, height=height, sh=sh, eh=eh, vertical_first=vertical_first
    )
    return pl.pallas_call(
        kernel,
        out_shape=jax.ShapeDtypeStruct((height, n_max, d), jnp.float32),
        in_specs=[_SMEM] + [_VMEM] * 10,
        out_specs=_VMEM,
        compiler_params=pltpu.CompilerParams(vmem_limit_bytes=vmem_limit_bytes),
    )(betas, intra_adj, axy, ayx, dxx, dyy, feats, wi, bi, wc, bc)


# ----------------------------------------------------------------------------
# Public wrapper: pad/stack lists into dense arrays, run the fused kernel once.
# ----------------------------------------------------------------------------
def _padded_vmem_bytes(x):
    """Approximate VMEM footprint of one operand after (sublane, 128-lane) tiling."""
    shape = x.shape
    itemsize = int(jnp.dtype(x.dtype).itemsize)
    sublane = 8 * max(1, 4 // itemsize)        # f32 -> 8, bf16 -> 16
    lead = 1
    for s in shape[:-2]:
        lead *= int(s)
    rows = -(-int(shape[-2]) // sublane) * sublane
    cols = -(-int(shape[-1]) // 128) * 128
    return lead * rows * cols * itemsize


def mee_layer_forward(
    params,
    intra_adjs,        # list of (n_i, n_i) normalized adjacencies, length = height
    inter_adjs,        # list of (n_i + n_{i+1}, ...) fused adjacencies, length = height-1
    features,          # list of (n_i, D) node features, length = height
    *,
    start_height=0,
    end_height=None,
    vertical_first=False,
    stem_beta=1.0,
    branch_beta=0.5,
    keep_beta=1.0,
    cross_beta=1.0,
):
    height = len(features)
    assert len(intra_adjs) == height
    assert len(inter_adjs) == height - 1

    sh = start_height
    eh = height - 1 if end_height is None else end_height

    d = features[0].shape[1]
    ns = [int(f.shape[0]) for f in features]
    n_max = max(ns)
    # Lane-dense padding for large graphs; sublane alignment only for tiny ones.
    if n_max >= 128:
        n_max = -(-n_max // 128) * 128
    else:
        n_max = -(-n_max // 8) * 8

    def pad2(a, r, c):
        return jnp.pad(a, ((0, r - a.shape[0]), (0, c - a.shape[1])))

    # Resolve get_conv sharing (i * len(convs) // height) and stack per height.
    intra_list = params["intra"]
    inter_list = params["inter"]
    wi = jnp.stack(
        [intra_list[i * len(intra_list) // height][0] for i in range(height)]
    ).astype(_BF16)
    bi = jnp.stack(
        [intra_list[i * len(intra_list) // height][1] for i in range(height)]
    ).astype(jnp.float32)
    if height > 1:
        wc = jnp.stack(
            [inter_list[i * len(inter_list) // (height - 1)][0] for i in range(height - 1)]
        )
        bc = jnp.stack(
            [inter_list[i * len(inter_list) // (height - 1)][1] for i in range(height - 1)]
        )
        # Fold cross_beta into the inter conv params (tiny DxD host-side transform).
        wc = (cross_beta * wc).astype(_BF16)
        bc = (cross_beta * bc).astype(jnp.float32)
    else:  # dummies (never indexed inside the kernel)
        wc = jnp.zeros((1, d, d), _BF16)
        bc = jnp.zeros((1, 1, d), jnp.float32)

    feats = jnp.stack([pad2(f, n_max, d) for f in features]).astype(jnp.float32)
    intra_adj = jnp.stack([pad2(a, n_max, n_max) for a in intra_adjs]).astype(_BF16)

    axy_l, ayx_l, dxx_l, dyy_l = [], [], [], []
    for i in range(height - 1):
        n_lo = ns[i]
        n_hi = ns[i + 1]
        a = inter_adjs[i]
        axx = a[:n_lo, :n_lo]
        ayy = a[n_lo:, n_lo:]
        # Fused bipartite inter graph + self loops + row-normalization => the xx/yy
        # blocks are diagonal.  Verify once host-side (concrete arrays).
        if not (bool(jnp.allclose(axx, jnp.diag(jnp.diag(axx)))) and
                bool(jnp.allclose(ayy, jnp.diag(jnp.diag(ayy))))):
            # TODO(synk): add a general dense Axx/Ayy fallback for non-bipartite inter graphs.
            raise NotImplementedError(
                "inter adjacency xx/yy blocks must be diagonal (bipartite fused graph)"
            )
        axy_l.append(pad2(a[:n_lo, n_lo:], n_max, n_max))
        ayx_l.append(pad2(a[n_lo:, :n_lo], n_max, n_max))
        dxx_l.append(jnp.pad(jnp.diag(axx)[:, None], ((0, n_max - n_lo), (0, 0))))
        dyy_l.append(jnp.pad(jnp.diag(ayy)[:, None], ((0, n_max - n_hi), (0, 0))))
    if height > 1:
        axy = jnp.stack(axy_l).astype(_BF16)
        ayx = jnp.stack(ayx_l).astype(_BF16)
        dxx = jnp.stack(dxx_l).astype(jnp.float32)
        dyy = jnp.stack(dyy_l).astype(jnp.float32)
    else:
        axy = ayx = jnp.zeros((1, n_max, n_max), _BF16)
        dxx = dyy = jnp.zeros((1, n_max, 1), jnp.float32)

    betas = jnp.array([stem_beta, branch_beta, keep_beta], dtype=jnp.float32)

    # Scoped VMEM limit sized from the actual resident footprint (+out, +headroom).
    operands = [intra_adj, axy, ayx, dxx, dyy, feats, wi, bi, wc, bc]
    resident = sum(_padded_vmem_bytes(x) for x in operands) + _padded_vmem_bytes(feats)
    vmem_limit_bytes = int(min(128 << 20, max(32 << 20, 2 * resident + (4 << 20))))

    out = _mee_fused_call(
        betas, intra_adj, axy, ayx, dxx, dyy, feats, wi, bi, wc, bc,
        height=height, sh=sh, eh=eh, vertical_first=vertical_first,
        vmem_limit_bytes=vmem_limit_bytes,
    )
    return [out[i, : ns[i], :] for i in range(height)]


# ----------------------------------------------------------------------------
# Pure-JAX f32 reference (mirrors the original list/concat formulation).
# ----------------------------------------------------------------------------
def _mee_reference(params, intra_adjs, inter_adjs, features, *, sh, eh,
                   vertical_first, stem_beta, branch_beta, keep_beta, cross_beta):
    height = len(features)
    intra_list = params["intra"]
    inter_list = params["inter"]

    def gconv(a, x, w, b):
        return a @ x @ w + b

    def rightward(xs):
        out = []
        for i in range(height):
            x = xs[i]
            if sh <= i <= eh:
                w, b = intra_list[i * len(intra_list) // height]
                x = gconv(intra_adjs[i], x, w, b)
            out.append(x)
        return out

    def vertical(inds, xs):
        for i in inds:
            if i + 1 >= height:
                continue
            nx, ny = xs[i], xs[i + 1]
            z = jnp.concatenate([nx, ny], axis=0)
            w, b = inter_list[i * len(inter_list) // (height - 1)]
            nz = gconv(inter_adjs[i], z, w, b)
            new_nx, new_ny = nz[: nx.shape[0]], nz[nx.shape[0]:]
            xs[i] = keep_beta * nx + cross_beta * new_nx
            xs[i + 1] = keep_beta * ny + cross_beta * new_ny

    xs = list(features)
    if not vertical_first:
        xs = rightward(xs)
    inds = list(range(sh, eh))
    vertical(inds, xs)
    if len(inds) > 1:
        vertical(inds[::-1], xs)
    if vertical_first:
        xs = rightward(xs)
    return [stem_beta * f + branch_beta * x for f, x in zip(features, xs)]


# ----------------------------------------------------------------------------
# Deterministic parameter / graph construction
# ----------------------------------------------------------------------------
def _row_normalize(a):
    a = a + jnp.eye(a.shape[0], dtype=jnp.float32)          # self loops
    deg = jnp.maximum(a.sum(axis=1, keepdims=True), 1.0)
    return a / deg


def make_intra_adj(key, n, p=0.3):
    a = (jax.random.uniform(key, (n, n)) < p).astype(jnp.float32)
    a = jnp.maximum(a, a.T)                                   # symmetric
    return _row_normalize(a)


def make_inter_adj(n_lo, n_hi):
    # bipartite fused graph on n_lo + n_hi nodes, cluster[j] = j % n_hi
    n = n_lo + n_hi
    a = jnp.zeros((n, n), dtype=jnp.float32)
    rows = jnp.arange(n_lo)
    cols = n_lo + (rows % n_hi)
    a = a.at[rows, cols].set(1.0)
    a = a.at[cols, rows].set(1.0)
    return _row_normalize(a)


def make_params(key, height, dim):
    intra, inter = [], []
    for _ in range(height):
        key, kw, kb = jax.random.split(key, 3)
        w = jax.random.normal(kw, (dim, dim), dtype=jnp.float32) * (1.0 / jnp.sqrt(dim))
        b = jax.random.normal(kb, (1, dim), dtype=jnp.float32) * 0.01
        intra.append((w, b))
    for _ in range(height - 1):
        key, kw, kb = jax.random.split(key, 3)
        w = jax.random.normal(kw, (dim, dim), dtype=jnp.float32) * (1.0 / jnp.sqrt(dim))
        b = jax.random.normal(kb, (1, dim), dtype=jnp.float32) * 0.01
        inter.append((w, b))
    return {"intra": intra, "inter": inter}


# ----------------------------------------------------------------------------
if __name__ == "__main__":
    key = jax.random.PRNGKey(0)

    height = 3
    dim = 32
    num_nodes = [16, 8, 8]          # nodes per height

    keys = jax.random.split(key, 16)
    features = [
        jax.random.normal(keys[i], (num_nodes[i], dim), dtype=jnp.float32)
        for i in range(height)
    ]
    intra_adjs = [make_intra_adj(keys[4 + i], num_nodes[i]) for i in range(height)]
    inter_adjs = [
        make_inter_adj(num_nodes[i], num_nodes[i + 1]) for i in range(height - 1)
    ]
    params = make_params(keys[8], height, dim)

    cfg = dict(
        start_height=0,
        end_height=None,
        vertical_first=False,
        stem_beta=1.0,
        branch_beta=0.5,
        keep_beta=1.0,
        cross_beta=1.0,
    )

    out = mee_layer_forward(params, intra_adjs, inter_adjs, features, **cfg)
    out = [jax.block_until_ready(o) for o in out]

    # correctness check against the pure-JAX f32 reference.  Kernel matmuls run on
    # the bf16 MXU path (f32 accumulation), so tolerance is loosened accordingly.
    ref = _mee_reference(
        params, intra_adjs, inter_adjs, features,
        sh=0, eh=height - 1, vertical_first=False,
        stem_beta=1.0, branch_beta=0.5, keep_beta=1.0, cross_beta=1.0,
    )
    assert all(o.shape == f.shape for o, f in zip(out, features))
    assert all(bool(jnp.all(jnp.isfinite(o))) for o in out)
    assert all(
        bool(jnp.allclose(o, r, rtol=5e-2, atol=5e-2)) for o, r in zip(out, ref)
    )
    print("KERNEL_OK")
</pallas_src>

<mosaic_0001>
module attributes {stable_mosaic.version = 11 : i64} {
  func.func @_mee_fused_kernel(%arg0: memref<3xf32, #tpu.memory_space<smem>>, %arg1: memref<3x16x16xbf16, #tpu.memory_space<vmem>>, %arg2: memref<2x16x16xbf16, #tpu.memory_space<vmem>>, %arg3: memref<2x16x16xbf16, #tpu.memory_space<vmem>>, %arg4: memref<2x16x1xf32, #tpu.memory_space<vmem>>, %arg5: memref<2x16x1xf32, #tpu.memory_space<vmem>>, %arg6: memref<3x16x32xf32, #tpu.memory_space<vmem>>, %arg7: memref<3x32x32xbf16, #tpu.memory_space<vmem>>, %arg8: memref<3x1x32xf32, #tpu.memory_space<vmem>>, %arg9: memref<2x32x32xbf16, #tpu.memory_space<vmem>>, %arg10: memref<2x1x32xf32, #tpu.memory_space<vmem>>, %arg11: memref<3x16x32xf32, #tpu.memory_space<vmem>>) attributes {dimension_semantics = [], scalar_prefetch = 0 : i64, scratch_operands = 0 : i64, tpu.core_type = #tpu.core_type<tc>} {
    %c0 = arith.constant 0 : index
    %0 = memref.load %arg0[%c0] : memref<3xf32, #tpu.memory_space<smem>>
    %c1 = arith.constant 1 : index
    %1 = memref.load %arg0[%c1] : memref<3xf32, #tpu.memory_space<smem>>
    %c2 = arith.constant 2 : index
    %2 = memref.load %arg0[%c2] : memref<3xf32, #tpu.memory_space<smem>>
    %c0_0 = arith.constant 0 : index
    %c0_1 = arith.constant 0 : index
    %c0_2 = arith.constant 0 : index
    %3 = vector.load %arg6[%c0_0, %c0_1, %c0_2] : memref<3x16x32xf32, #tpu.memory_space<vmem>>, vector<3x16x32xf32>
    %c0_3 = arith.constant 0 : index
    %c0_4 = arith.constant 0 : index
    %c0_5 = arith.constant 0 : index
    %4 = vector.load %arg11[%c0_3, %c0_4, %c0_5] : memref<3x16x32xf32, #tpu.memory_space<vmem>>, vector<3x16x32xf32>
    tpu.vector_store %arg11[%c0_3, %c0_4, %c0_5], %3 {strides = array<i32>} : memref<3x16x32xf32, #tpu.memory_space<vmem>>, vector<3x16x32xf32>,
    %c0_6 = arith.constant 0 : index
    %c0_7 = arith.constant 0 : index
    %c0_8 = arith.constant 0 : index
    %5 = vector.load %arg11[%c0_6, %c0_7, %c0_8] : memref<3x16x32xf32, #tpu.memory_space<vmem>>, vector<1x16x32xf32>
    %6 = vector.shape_cast %5 : vector<1x16x32xf32> to vector<16x32xf32>
    %c0_9 = arith.constant 0 : index
    %c0_10 = arith.constant 0 : index
    %c0_11 = arith.constant 0 : index
    %7 = vector.load %arg1[%c0_9, %c0_10, %c0_11] : memref<3x16x16xbf16, #tpu.memory_space<vmem>>, vector<1x16x16xbf16>
    %8 = vector.shape_cast %7 : vector<1x16x16xbf16> to vector<16x16xbf16>
    %9 = arith.truncf %6 : vector<16x32xf32> to vector<16x32xbf16>
    %cst = arith.constant dense<0.000000e+00> : vector<16x32xf32>
    %10 = tpu.matmul %8, %9, %cst {dimension_numbers = #tpu.dot_dimension_numbers<[1], [0], [0], [1], [0, 0, 1, 1], [], []>} : vector<16x16xbf16>, vector<16x32xbf16>, vector<16x32xf32> -> vector<16x32xf32>
    %11 = arith.truncf %10 : vector<16x32xf32> to vector<16x32xbf16>
    %c0_12 = arith.constant 0 : index
    %c0_13 = arith.constant 0 : index
    %c0_14 = arith.constant 0 : index
    %12 = vector.load %arg7[%c0_12, %c0_13, %c0_14] : memref<3x32x32xbf16, #tpu.memory_space<vmem>>, vector<1x32x32xbf16>
    %13 = vector.shape_cast %12 : vector<1x32x32xbf16> to vector<32x32xbf16>
    %cst_15 = arith.constant dense<0.000000e+00> : vector<16x32xf32>
    %14 = tpu.matmul %11, %13, %cst_15 {dimension_numbers = #tpu.dot_dimension_numbers<[1], [0], [0], [1], [0, 0, 1, 1], [], []>} : vector<16x32xbf16>, vector<32x32xbf16>, vector<16x32xf32> -> vector<16x32xf32>
    %c0_16 = arith.constant 0 : index
    %c0_17 = arith.constant 0 : index
    %c0_18 = arith.constant 0 : index
    %15 = vector.load %arg8[%c0_16, %c0_17, %c0_18] : memref<3x1x32xf32, #tpu.memory_space<vmem>>, vector<1x1x32xf32>
    %16 = vector.shape_cast %15 : vector<1x1x32xf32> to vector<1x32xf32>
    %17 = vector.broadcast %16 : vector<1x32xf32> to vector<16x32xf32>
    %18 = arith.addf %14, %17 : vector<16x32xf32>
    %c0_19 = arith.constant 0 : index
    %c0_20 = arith.constant 0 : index
    %c0_21 = arith.constant 0 : index
    %19 = vector.load %arg11[%c0_19, %c0_20, %c0_21] : memref<3x16x32xf32, #tpu.memory_space<vmem>>, vector<1x16x32xf32>
    %20 = vector.shape_cast %19 : vector<1x16x32xf32> to vector<16x32xf32>
    %21 = vector.shape_cast %18 : vector<16x32xf32> to vector<1x16x32xf32>
    tpu.vector_store %arg11[%c0_19, %c0_20, %c0_21], %21 {strides = array<i32>} : memref<3x16x32xf32, #tpu.memory_space<vmem>>, vector<1x16x32xf32>,
    %c1_22 = arith.constant 1 : index
    %c0_23 = arith.constant 0 : index
    %c0_24 = arith.constant 0 : index
    %22 = vector.load %arg11[%c1_22, %c0_23, %c0_24] : memref<3x16x32xf32, #tpu.memory_space<vmem>>, vector<1x16x32xf32>
    %23 = vector.shape_cast %22 : vector<1x16x32xf32> to vector<16x32xf32>
    %c1_25 = arith.constant 1 : index
    %c0_26 = arith.constant 0 : index
    %c0_27 = arith.constant 0 : index
    %24 = vector.load %arg1[%c1_25, %c0_26, %c0_27] : memref<3x16x16xbf16, #tpu.memory_space<vmem>>, vector<1x16x16xbf16>
    %25 = vector.shape_cast %24 : vector<1x16x16xbf16> to vector<16x16xbf16>
    %26 = arith.truncf %23 : vector<16x32xf32> to vector<16x32xbf16>
    %cst_28 = arith.constant dense<0.000000e+00> : vector<16x32xf32>
    %27 = tpu.matmul %25, %26, %cst_28 {dimension_numbers = #tpu.dot_dimension_numbers<[1], [0], [0], [1], [0, 0, 1, 1], [], []>} : vector<16x16xbf16>, vector<16x32xbf16>, vector<16x32xf32> -> vector<16x32xf32>
    %28 = arith.truncf %27 : vector<16x32xf32> to vector<16x32xbf16>
    %c1_29 = arith.constant 1 : index
    %c0_30 = arith.constant 0 : index
    %c0_31 = arith.constant 0 : index
    %29 = vector.load %arg7[%c1_29, %c0_30, %c0_31] : memref<3x32x32xbf16, #tpu.memory_space<vmem>>, vector<1x32x32xbf16>
    %30 = vector.shape_cast %29 : vector<1x32x32xbf16> to vector<32x32xbf16>
    %cst_32 = arith.constant dense<0.000000e+00> : vector<16x32xf32>
    %31 = tpu.matmul %28, %30, %cst_32 {dimension_numbers = #tpu.dot_dimension_numbers<[1], [0], [0], [1], [0, 0, 1, 1], [], []>} : vector<16x32xbf16>, vector<32x32xbf16>, vector<16x32xf32> -> vector<16x32xf32>
    %c1_33 = arith.constant 1 : index
    %c0_34 = arith.constant 0 : index
    %c0_35 = arith.constant 0 : index
    %32 = vector.load %arg8[%c1_33, %c0_34, %c0_35] : memref<3x1x32xf32, #tpu.memory_space<vmem>>, vector<1x1x32xf32>
    %33 = vector.shape_cast %32 : vector<1x1x32xf32> to vector<1x32xf32>
    %34 = vector.broadcast %33 : vector<1x32xf32> to vector<16x32xf32>
    %35 = arith.addf %31, %34 : vector<16x32xf32>
    %c1_36 = arith.constant 1 : index
    %c0_37 = arith.constant 0 : index
    %c0_38 = arith.constant 0 : index
    %36 = vector.load %arg11[%c1_36, %c0_37, %c0_38] : memref<3x16x32xf32, #tpu.memory_space<vmem>>, vector<1x16x32xf32>
    %37 = vector.shape_cast %36 : vector<1x16x32xf32> to vector<16x32xf32>
    %38 = vector.shape_cast %35 : vector<16x32xf32> to vector<1x16x32xf32>
    tpu.vector_store %arg11[%c1_36, %c0_37, %c0_38], %38 {strides = array<i32>} : memref<3x16x32xf32, #tpu.memory_space<vmem>>, vector<1x16x32xf32>,
    %c2_39 = arith.constant 2 : index
    %c0_40 = arith.constant 0 : index
    %c0_41 = arith.constant 0 : index
    %39 = vector.load %arg11[%c2_39, %c0_40, %c0_41] : memref<3x16x32xf32, #tpu.memory_space<vmem>>, vector<1x16x32xf32>
    %40 = vector.shape_cast %39 : vector<1x16x32xf32> to vector<16x32xf32>
    %c2_42 = arith.constant 2 : index
    %c0_43 = arith.constant 0 : index
    %c0_44 = arith.constant 0 : index
    %41 = vector.load %arg1[%c2_42, %c0_43, %c0_44] : memref<3x16x16xbf16, #tpu.memory_space<vmem>>, vector<1x16x16xbf16>
    %42 = vector.shape_cast %41 : vector<1x16x16xbf16> to vector<16x16xbf16>
    %43 = arith.truncf %40 : vector<16x32xf32> to vector<16x32xbf16>
    %cst_45 = arith.constant dense<0.000000e+00> : vector<16x32xf32>
    %44 = tpu.matmul %42, %43, %cst_45 {dimension_numbers = #tpu.dot_dimension_numbers<[1], [0], [0], [1], [0, 0, 1, 1], [], []>} : vector<16x16xbf16>, vector<16x32xbf16>, vector<16x32xf32> -> vector<16x32xf32>
    %45 = arith.truncf %44 : vector<16x32xf32> to vector<16x32xbf16>
    %c2_46 = arith.constant 2 : index
    %c0_47 = arith.constant 0 : index
    %c0_48 = arith.constant 0 : index
    %46 = vector.load %arg7[%c2_46, %c0_47, %c0_48] : memref<3x32x32xbf16, #tpu.memory_space<vmem>>, vector<1x32x32xbf16>
    %47 = vector.shape_cast %46 : vector<1x32x32xbf16> to vector<32x32xbf16>
    %cst_49 = arith.constant dense<0.000000e+00> : vector<16x32xf32>
    %48 = tpu.matmul %45, %47, %cst_49 {dimension_numbers = #tpu.dot_dimension_numbers<[1], [0], [0], [1], [0, 0, 1, 1], [], []>} : vector<16x32xbf16>, vector<32x32xbf16>, vector<16x32xf32> -> vector<16x32xf32>
    %c2_50 = arith.constant 2 : index
    %c0_51 = arith.constant 0 : index
    %c0_52 = arith.constant 0 : index
    %49 = vector.load %arg8[%c2_50, %c0_51, %c0_52] : memref<3x1x32xf32, #tpu.memory_space<vmem>>, vector<1x1x32xf32>
    %50 = vector.shape_cast %49 : vector<1x1x32xf32> to vector<1x32xf32>
    %51 = vector.broadcast %50 : vector<1x32xf32> to vector<16x32xf32>
    %52 = arith.addf %48, %51 : vector<16x32xf32>
    %c2_53 = arith.constant 2 : index
    %c0_54 = arith.constant 0 : index
    %c0_55 = arith.constant 0 : index
    %53 = vector.load %arg11[%c2_53, %c0_54, %c0_55] : memref<3x16x32xf32, #tpu.memory_space<vmem>>, vector<1x16x32xf32>
    %54 = vector.shape_cast %53 : vector<1x16x32xf32> to vector<16x32xf32>
    %55 = vector.shape_cast %52 : vector<16x32xf32> to vector<1x16x32xf32>
    tpu.vector_store %arg11[%c2_53, %c0_54, %c0_55], %55 {strides = array<i32>} : memref<3x16x32xf32, #tpu.memory_space<vmem>>, vector<1x16x32xf32>,
    %c0_56 = arith.constant 0 : index
    %c0_57 = arith.constant 0 : index
    %c0_58 = arith.constant 0 : index
    %56 = vector.load %arg11[%c0_56, %c0_57, %c0_58] : memref<3x16x32xf32, #tpu.memory_space<vmem>>, vector<1x16x32xf32>
    %57 = vector.shape_cast %56 : vector<1x16x32xf32> to vector<16x32xf32>
    %c1_59 = arith.constant 1 : index
    %c0_60 = arith.constant 0 : index
    %c0_61 = arith.constant 0 : index
    %58 = vector.load %arg11[%c1_59, %c0_60, %c0_61] : memref<3x16x32xf32, #tpu.memory_space<vmem>>, vector<1x16x32xf32>
    %59 = vector.shape_cast %58 : vector<1x16x32xf32> to vector<16x32xf32>
    %c0_62 = arith.constant 0 : index
    %c0_63 = arith.constant 0 : index
    %c0_64 = arith.constant 0 : index
    %60 = vector.load %arg9[%c0_62, %c0_63, %c0_64] : memref<2x32x32xbf16, #tpu.memory_space<vmem>>, vector<1x32x32xbf16>
    %61 = vector.shape_cast %60 : vector<1x32x32xbf16> to vector<32x32xbf16>
    %c0_65 = arith.constant 0 : index
    %c0_66 = arith.constant 0 : index
    %c0_67 = arith.constant 0 : index
    %62 = vector.load %arg10[%c0_65, %c0_66, %c0_67] : memref<2x1x32xf32, #tpu.memory_space<vmem>>, vector<1x1x32xf32>
    %63 = vector.shape_cast %62 : vector<1x1x32xf32> to vector<1x32xf32>
    %64 = arith.truncf %57 : vector<16x32xf32> to vector<16x32xbf16>
    %cst_68 = arith.constant dense<0.000000e+00> : vector<16x32xf32>
    %65 = tpu.matmul %64, %61, %cst_68 {dimension_numbers = #tpu.dot_dimension_numbers<[1], [0], [0], [1], [0, 0, 1, 1], [], []>} : vector<16x32xbf16>, vector<32x32xbf16>, vector<16x32xf32> -> vector<16x32xf32>
    %66 = arith.truncf %59 : vector<16x32xf32> to vector<16x32xbf16>
    %cst_69 = arith.constant dense<0.000000e+00> : vector<16x32xf32>
    %67 = tpu.matmul %66, %61, %cst_69 {dimension_numbers = #tpu.dot_dimension_numbers<[1], [0], [0], [1], [0, 0, 1, 1], [], []>} : vector<16x32xbf16>, vector<32x32xbf16>, vector<16x32xf32> -> vector<16x32xf32>
    %c0_70 = arith.constant 0 : index
    %c0_71 = arith.constant 0 : index
    %c0_72 = arith.constant 0 : index
    %68 = vector.load %arg4[%c0_70, %c0_71, %c0_72] : memref<2x16x1xf32, #tpu.memory_space<vmem>>, vector<1x16x1xf32>
    %69 = vector.shape_cast %68 : vector<1x16x1xf32> to vector<16x1xf32>
    %70 = vector.broadcast %69 : vector<16x1xf32> to vector<16x32xf32>
    %71 = arith.mulf %70, %65 : vector<16x32xf32>
    %c0_73 = arith.constant 0 : index
    %c0_74 = arith.constant 0 : index
    %c0_75 = arith.constant 0 : index
    %72 = vector.load %arg2[%c0_73, %c0_74, %c0_75] : memref<2x16x16xbf16, #tpu.memory_space<vmem>>, vector<1x16x16xbf16>
    %73 = vector.shape_cast %72 : vector<1x16x16xbf16> to vector<16x16xbf16>
    %74 = arith.truncf %67 : vector<16x32xf32> to vector<16x32xbf16>
    %cst_76 = arith.constant dense<0.000000e+00> : vector<16x32xf32>
    %75 = tpu.matmul %73, %74, %cst_76 {dimension_numbers = #tpu.dot_dimension_numbers<[1], [0], [0], [1], [0, 0, 1, 1], [], []>} : vector<16x16xbf16>, vector<16x32xbf16>, vector<16x32xf32> -> vector<16x32xf32>
    %76 = arith.addf %71, %75 : vector<16x32xf32>
    %77 = vector.broadcast %63 : vector<1x32xf32> to vector<16x32xf32>
    %78 = arith.addf %76, %77 : vector<16x32xf32>
    %c0_77 = arith.constant 0 : index
    %c0_78 = arith.constant 0 : index
    %c0_79 = arith.constant 0 : index
    %79 = vector.load %arg5[%c0_77, %c0_78, %c0_79] : memref<2x16x1xf32, #tpu.memory_space<vmem>>, vector<1x16x1xf32>
    %80 = vector.shape_cast %79 : vector<1x16x1xf32> to vector<16x1xf32>
    %81 = vector.broadcast %80 : vector<16x1xf32> to vector<16x32xf32>
    %82 = arith.mulf %81, %67 : vector<16x32xf32>
    %c0_80 = arith.constant 0 : index
    %c0_81 = arith.constant 0 : index
    %c0_82 = arith.constant 0 : index
    %83 = vector.load %arg3[%c0_80, %c0_81, %c0_82] : memref<2x16x16xbf16, #tpu.memory_space<vmem>>, vector<1x16x16xbf16>
    %84 = vector.shape_cast %83 : vector<1x16x16xbf16> to vector<16x16xbf16>
    %85 = arith.truncf %65 : vector<16x32xf32> to vector<16x32xbf16>
    %cst_83 = arith.constant dense<0.000000e+00> : vector<16x32xf32>
    %86 = tpu.matmul %84, %85, %cst_83 {dimension_numbers = #tpu.dot_dimension_numbers<[1], [0], [0], [1], [0, 0, 1, 1], [], []>} : vector<16x16xbf16>, vector<16x32xbf16>, vector<16x32xf32> -> vector<16x32xf32>
    %87 = arith.addf %82, %86 : vector<16x32xf32>
    %88 = vector.broadcast %63 : vector<1x32xf32> to vector<16x32xf32>
    %89 = arith.addf %87, %88 : vector<16x32xf32>
    %90 = vector.broadcast %2 : f32 to vector<16x32xf32>
    %91 = arith.mulf %90, %57 : vector<16x32xf32>
    %92 = arith.addf %91, %78 : vector<16x32xf32>
    %c0_84 = arith.constant 0 : index
    %c0_85 = arith.constant 0 : index
    %c0_86 = arith.constant 0 : index
    %93 = vector.load %arg11[%c0_84, %c0_85, %c0_86] : memref<3x16x32xf32, #tpu.memory_space<vmem>>, vector<1x16x32xf32>
    %94 = vector.shape_cast %93 : vector<1x16x32xf32> to vector<16x32xf32>
    %95 = vector.shape_cast %92 : vector<16x32xf32> to vector<1x16x32xf32>
    tpu.vector_store %arg11[%c0_84, %c0_85, %c0_86], %95 {strides = array<i32>} : memref<3x16x32xf32, #tpu.memory_space<vmem>>, vector<1x16x32xf32>,
    %96 = vector.broadcast %2 : f32 to vector<16x32xf32>
    %97 = arith.mulf %96, %59 : vector<16x32xf32>
    %98 = arith.addf %97, %89 : vector<16x32xf32>
    %c1_87 = arith.constant 1 : index
    %c0_88 = arith.constant 0 : index
    %c0_89 = arith.constant 0 : index
    %99 = vector.load %arg11[%c1_87, %c0_88, %c0_89] : memref<3x16x32xf32, #tpu.memory_space<vmem>>, vector<1x16x32xf32>
    %100 = vector.shape_cast %99 : vector<1x16x32xf32> to vector<16x32xf32>
    %101 = vector.shape_cast %98 : vector<16x32xf32> to vector<1x16x32xf32>
    tpu.vector_store %arg11[%c1_87, %c0_88, %c0_89], %101 {strides = array<i32>} : memref<3x16x32xf32, #tpu.memory_space<vmem>>, vector<1x16x32xf32>,
    %c1_90 = arith.constant 1 : index
    %c0_91 = arith.constant 0 : index
    %c0_92 = arith.constant 0 : index
    %102 = vector.load %arg11[%c1_90, %c0_91, %c0_92] : memref<3x16x32xf32, #tpu.memory_space<vmem>>, vector<1x16x32xf32>
    %103 = vector.shape_cast %102 : vector<1x16x32xf32> to vector<16x32xf32>
    %c2_93 = arith.constant 2 : index
    %c0_94 = arith.constant 0 : index
    %c0_95 = arith.constant 0 : index
    %104 = vector.load %arg11[%c2_93, %c0_94, %c0_95] : memref<3x16x32xf32, #tpu.memory_space<vmem>>, vector<1x16x32xf32>
    %105 = vector.shape_cast %104 : vector<1x16x32xf32> to vector<16x32xf32>
    %c1_96 = arith.constant 1 : index
    %c0_97 = arith.constant 0 : index
    %c0_98 = arith.constant 0 : index
    %106 = vector.load %arg9[%c1_96, %c0_97, %c0_98] : memref<2x32x32xbf16, #tpu.memory_space<vmem>>, vector<1x32x32xbf16>
    %107 = vector.shape_cast %106 : vector<1x32x32xbf16> to vector<32x32xbf16>
    %c1_99 = arith.constant 1 : index
    %c0_100 = arith.constant 0 : index
    %c0_101 = arith.constant 0 : index
    %108 = vector.load %arg10[%c1_99, %c0_100, %c0_101] : memref<2x1x32xf32, #tpu.memory_space<vmem>>, vector<1x1x32xf32>
    %109 = vector.shape_cast %108 : vector<1x1x32xf32> to vector<1x32xf32>
    %110 = arith.truncf %103 : vector<16x32xf32> to vector<16x32xbf16>
    %cst_102 = arith.constant dense<0.000000e+00> : vector<16x32xf32>
    %111 = tpu.matmul %110, %107, %cst_102 {dimension_numbers = #tpu.dot_dimension_numbers<[1], [0], [0], [1], [0, 0, 1, 1], [], []>} : vector<16x32xbf16>, vector<32x32xbf16>, vector<16x32xf32> -> vector<16x32xf32>
    %112 = arith.truncf %105 : vector<16x32xf32> to vector<16x32xbf16>
    %cst_103 = arith.constant dense<0.000000e+00> : vector<16x32xf32>
    %113 = tpu.matmul %112, %107, %cst_103 {dimension_numbers = #tpu.dot_dimension_numbers<[1], [0], [0], [1], [0, 0, 1, 1], [], []>} : vector<16x32xbf16>, vector<32x32xbf16>, vector<16x32xf32> -> vector<16x32xf32>
    %c1_104 = arith.constant 1 : index
    %c0_105 = arith.constant 0 : index
    %c0_106 = arith.constant 0 : index
    %114 = vector.load %arg4[%c1_104, %c0_105, %c0_106] : memref<2x16x1xf32, #tpu.memory_space<vmem>>, vector<1x16x1xf32>
    %115 = vector.shape_cast %114 : vector<1x16x1xf32> to vector<16x1xf32>
    %116 = vector.broadcast %115 : vector<16x1xf32> to vector<16x32xf32>
    %117 = arith.mulf %116, %111 : vector<16x32xf32>
    %c1_107 = arith.constant 1 : index
    %c0_108 = arith.constant 0 : index
    %c0_109 = arith.constant 0 : index
    %118 = vector.load %arg2[%c1_107, %c0_108, %c0_109] : memref<2x16x16xbf16, #tpu.memory_space<vmem>>, vector<1x16x16xbf16>
    %119 = vector.shape_cast %118 : vector<1x16x16xbf16> to vector<16x16xbf16>
    %120 = arith.truncf %113 : vector<16x32xf32> to vector<16x32xbf16>
    %cst_110 = arith.constant dense<0.000000e+00> : vector<16x32xf32>
    %121 = tpu.matmul %119, %120, %cst_110 {dimension_numbers = #tpu.dot_dimension_numbers<[1], [0], [0], [1], [0, 0, 1, 1], [], []>} : vector<16x16xbf16>, vector<16x32xbf16>, vector<16x32xf32> -> vector<16x32xf32>
    %122 = arith.addf %117, %121 : vector<16x32xf32>
    %123 = vector.broadcast %109 : vector<1x32xf32> to vector<16x32xf32>
    %124 = arith.addf %122, %123 : vector<16x32xf32>
    %c1_111 = arith.constant 1 : index
    %c0_112 = arith.constant 0 : index
    %c0_113 = arith.constant 0 : index
    %125 = vector.load %arg5[%c1_111, %c0_112, %c0_113] : memref<2x16x1xf32, #tpu.memory_space<vmem>>, vector<1x16x1xf32>
    %126 = vector.shape_cast %125 : vector<1x16x1xf32> to vector<16x1xf32>
    %127 = vector.broadcast %126 : vector<16x1xf32> to vector<16x32xf32>
    %128 = arith.mulf %127, %113 : vector<16x32xf32>
    %c1_114 = arith.constant 1 : index
    %c0_115 = arith.constant 0 : index
    %c0_116 = arith.constant 0 : index
    %129 = vector.load %arg3[%c1_114, %c0_115, %c0_116] : memref<2x16x16xbf16, #tpu.memory_space<vmem>>, vector<1x16x16xbf16>
    %130 = vector.shape_cast %129 : vector<1x16x16xbf16> to vector<16x16xbf16>
    %131 = arith.truncf %111 : vector<16x32xf32> to vector<16x32xbf16>
    %cst_117 = arith.constant dense<0.000000e+00> : vector<16x32xf32>
    %132 = tpu.matmul %130, %131, %cst_117 {dimension_numbers = #tpu.dot_dimension_numbers<[1], [0], [0], [1], [0, 0, 1, 1], [], []>} : vector<16x16xbf16>, vector<16x32xbf16>, vector<16x32xf32> -> vector<16x32xf32>
    %133 = arith.addf %128, %132 : vector<16x32xf32>
    %134 = vector.broadcast %109 : vector<1x32xf32> to vector<16x32xf32>
    %135 = arith.addf %133, %134 : vector<16x32xf32>
    %136 = vector.broadcast %2 : f32 to vector<16x32xf32>
    %137 = arith.mulf %136, %103 : vector<16x32xf32>
    %138 = arith.addf %137, %124 : vector<16x32xf32>
    %c1_118 = arith.constant 1 : index
    %c0_119 = arith.constant 0 : index
    %c0_120 = arith.constant 0 : index
    %139 = vector.load %arg11[%c1_118, %c0_119, %c0_120] : memref<3x16x32xf32, #tpu.memory_space<vmem>>, vector<1x16x32xf32>
    %140 = vector.shape_cast %139 : vector<1x16x32xf32> to vector<16x32xf32>
    %141 = vector.shape_cast %138 : vector<16x32xf32> to vector<1x16x32xf32>
    tpu.vector_store %arg11[%c1_118, %c0_119, %c0_120], %141 {strides = array<i32>} : memref<3x16x32xf32, #tpu.memory_space<vmem>>, vector<1x16x32xf32>,
    %142 = vector.broadcast %2 : f32 to vector<16x32xf32>
    %143 = arith.mulf %142, %105 : vector<16x32xf32>
    %144 = arith.addf %143, %135 : vector<16x32xf32>
    %c2_121 = arith.constant 2 : index
    %c0_122 = arith.constant 0 : index
    %c0_123 = arith.constant 0 : index
    %145 = vector.load %arg11[%c2_121, %c0_122, %c0_123] : memref<3x16x32xf32, #tpu.memory_space<vmem>>, vector<1x16x32xf32>
    %146 = vector.shape_cast %145 : vector<1x16x32xf32> to vector<16x32xf32>
    %147 = vector.shape_cast %144 : vector<16x32xf32> to vector<1x16x32xf32>
    tpu.vector_store %arg11[%c2_121, %c0_122, %c0_123], %147 {strides = array<i32>} : memref<3x16x32xf32, #tpu.memory_space<vmem>>, vector<1x16x32xf32>,
    %c1_124 = arith.constant 1 : index
    %c0_125 = arith.constant 0 : index
    %c0_126 = arith.constant 0 : index
    %148 = vector.load %arg11[%c1_124, %c0_125, %c0_126] : memref<3x16x32xf32, #tpu.memory_space<vmem>>, vector<1x16x32xf32>
    %149 = vector.shape_cast %148 : vector<1x16x32xf32> to vector<16x32xf32>
    %c2_127 = arith.constant 2 : index
    %c0_128 = arith.constant 0 : index
    %c0_129 = arith.constant 0 : index
    %150 = vector.load %arg11[%c2_127, %c0_128, %c0_129] : memref<3x16x32xf32, #tpu.memory_space<vmem>>, vector<1x16x32xf32>
    %151 = vector.shape_cast %150 : vector<1x16x32xf32> to vector<16x32xf32>
    %c1_130 = arith.constant 1 : index
    %c0_131 = arith.constant 0 : index
    %c0_132 = arith.constant 0 : index
    %152 = vector.load %arg9[%c1_130, %c0_131, %c0_132] : memref<2x32x32xbf16, #tpu.memory_space<vmem>>, vector<1x32x32xbf16>
    %153 = vector.shape_cast %152 : vector<1x32x32xbf16> to vector<32x32xbf16>
    %c1_133 = arith.constant 1 : index
    %c0_134 = arith.constant 0 : index
    %c0_135 = arith.constant 0 : index
    %154 = vector.load %arg10[%c1_133, %c0_134, %c0_135] : memref<2x1x32xf32, #tpu.memory_space<vmem>>, vector<1x1x32xf32>
    %155 = vector.shape_cast %154 : vector<1x1x32xf32> to vector<1x32xf32>
    %156 = arith.truncf %149 : vector<16x32xf32> to vector<16x32xbf16>
    %cst_136 = arith.constant dense<0.000000e+00> : vector<16x32xf32>
    %157 = tpu.matmul %156, %153, %cst_136 {dimension_numbers = #tpu.dot_dimension_numbers<[1], [0], [0], [1], [0, 0, 1, 1], [], []>} : vector<16x32xbf16>, vector<32x32xbf16>, vector<16x32xf32> -> vector<16x32xf32>
    %158 = arith.truncf %151 : vector<16x32xf32> to vector<16x32xbf16>
    %cst_137 = arith.constant dense<0.000000e+00> : vector<16x32xf32>
    %159 = tpu.matmul %158, %153, %cst_137 {dimension_numbers = #tpu.dot_dimension_numbers<[1], [0], [0], [1], [0, 0, 1, 1], [], []>} : vector<16x32xbf16>, vector<32x32xbf16>, vector<16x32xf32> -> vector<16x32xf32>
    %c1_138 = arith.constant 1 : index
    %c0_139 = arith.constant 0 : index
    %c0_140 = arith.constant 0 : index
    %160 = vector.load %arg4[%c1_138, %c0_139, %c0_140] : memref<2x16x1xf32, #tpu.memory_space<vmem>>, vector<1x16x1xf32>
    %161 = vector.shape_cast %160 : vector<1x16x1xf32> to vector<16x1xf32>
    %162 = vector.broadcast %161 : vector<16x1xf32> to vector<16x32xf32>
    %163 = arith.mulf %162, %157 : vector<16x32xf32>
    %c1_141 = arith.constant 1 : index
    %c0_142 = arith.constant 0 : index
    %c0_143 = arith.constant 0 : index
    %164 = vector.load %arg2[%c1_141, %c0_142, %c0_143] : memref<2x16x16xbf16, #tpu.memory_space<vmem>>, vector<1x16x16xbf16>
    %165 = vector.shape_cast %164 : vector<1x16x16xbf16> to vector<16x16xbf16>
    %166 = arith.truncf %159 : vector<16x32xf32> to vector<16x32xbf16>
    %cst_144 = arith.constant dense<0.000000e+00> : vector<16x32xf32>
    %167 = tpu.matmul %165, %166, %cst_144 {dimension_numbers = #tpu.dot_dimension_numbers<[1], [0], [0], [1], [0, 0, 1, 1], [], []>} : vector<16x16xbf16>, vector<16x32xbf16>, vector<16x32xf32> -> vector<16x32xf32>
    %168 = arith.addf %163, %167 : vector<16x32xf32>
    %169 = vector.broadcast %155 : vector<1x32xf32> to vector<16x32xf32>
    %170 = arith.addf %168, %169 : vector<16x32xf32>
    %c1_145 = arith.constant 1 : index
    %c0_146 = arith.constant 0 : index
    %c0_147 = arith.constant 0 : index
    %171 = vector.load %arg5[%c1_145, %c0_146, %c0_147] : memref<2x16x1xf32, #tpu.memory_space<vmem>>, vector<1x16x1xf32>
    %172 = vector.shape_cast %171 : vector<1x16x1xf32> to vector<16x1xf32>
    %173 = vector.broadcast %172 : vector<16x1xf32> to vector<16x32xf32>
    %174 = arith.mulf %173, %159 : vector<16x32xf32>
    %c1_148 = arith.constant 1 : index
    %c0_149 = arith.constant 0 : index
    %c0_150 = arith.constant 0 : index
    %175 = vector.load %arg3[%c1_148, %c0_149, %c0_150] : memref<2x16x16xbf16, #tpu.memory_space<vmem>>, vector<1x16x16xbf16>
    %176 = vector.shape_cast %175 : vector<1x16x16xbf16> to vector<16x16xbf16>
    %177 = arith.truncf %157 : vector<16x32xf32> to vector<16x32xbf16>
    %cst_151 = arith.constant dense<0.000000e+00> : vector<16x32xf32>
    %178 = tpu.matmul %176, %177, %cst_151 {dimension_numbers = #tpu.dot_dimension_numbers<[1], [0], [0], [1], [0, 0, 1, 1], [], []>} : vector<16x16xbf16>, vector<16x32xbf16>, vector<16x32xf32> -> vector<16x32xf32>
    %179 = arith.addf %174, %178 : vector<16x32xf32>
    %180 = vector.broadcast %155 : vector<1x32xf32> to vector<16x32xf32>
    %181 = arith.addf %179, %180 : vector<16x32xf32>
    %182 = vector.broadcast %2 : f32 to vector<16x32xf32>
    %183 = arith.mulf %182, %149 : vector<16x32xf32>
    %184 = arith.addf %183, %170 : vector<16x32xf32>
    %c1_152 = arith.constant 1 : index
    %c0_153 = arith.constant 0 : index
    %c0_154 = arith.constant 0 : index
    %185 = vector.load %arg11[%c1_152, %c0_153, %c0_154] : memref<3x16x32xf32, #tpu.memory_space<vmem>>, vector<1x16x32xf32>
    %186 = vector.shape_cast %185 : vector<1x16x32xf32> to vector<16x32xf32>
    %187 = vector.shape_cast %184 : vector<16x32xf32> to vector<1x16x32xf32>
    tpu.vector_store %arg11[%c1_152, %c0_153, %c0_154], %187 {strides = array<i32>} : memref<3x16x32xf32, #tpu.memory_space<vmem>>, vector<1x16x32xf32>,
    %188 = vector.broadcast %2 : f32 to vector<16x32xf32>
    %189 = arith.mulf %188, %151 : vector<16x32xf32>
    %190 = arith.addf %189, %181 : vector<16x32xf32>
    %c2_155 = arith.constant 2 : index
    %c0_156 = arith.constant 0 : index
    %c0_157 = arith.constant 0 : index
    %191 = vector.load %arg11[%c2_155, %c0_156, %c0_157] : memref<3x16x32xf32, #tpu.memory_space<vmem>>, vector<1x16x32xf32>
    %192 = vector.shape_cast %191 : vector<1x16x32xf32> to vector<16x32xf32>
    %193 = vector.shape_cast %190 : vector<16x32xf32> to vector<1x16x32xf32>
    tpu.vector_store %arg11[%c2_155, %c0_156, %c0_157], %193 {strides = array<i32>} : memref<3x16x32xf32, #tpu.memory_space<vmem>>, vector<1x16x32xf32>,
    %c0_158 = arith.constant 0 : index
    %c0_159 = arith.constant 0 : index
    %c0_160 = arith.constant 0 : index
    %194 = vector.load %arg11[%c0_158, %c0_159, %c0_160] : memref<3x16x32xf32, #tpu.memory_space<vmem>>, vector<1x16x32xf32>
    %195 = vector.shape_cast %194 : vector<1x16x32xf32> to vector<16x32xf32>
    %c1_161 = arith.constant 1 : index
    %c0_162 = arith.constant 0 : index
    %c0_163 = arith.constant 0 : index
    %196 = vector.load %arg11[%c1_161, %c0_162, %c0_163] : memref<3x16x32xf32, #tpu.memory_space<vmem>>, vector<1x16x32xf32>
    %197 = vector.shape_cast %196 : vector<1x16x32xf32> to vector<16x32xf32>
    %c0_164 = arith.constant 0 : index
    %c0_165 = arith.constant 0 : index
    %c0_166 = arith.constant 0 : index
    %198 = vector.load %arg9[%c0_164, %c0_165, %c0_166] : memref<2x32x32xbf16, #tpu.memory_space<vmem>>, vector<1x32x32xbf16>
    %199 = vector.shape_cast %198 : vector<1x32x32xbf16> to vector<32x32xbf16>
    %c0_167 = arith.constant 0 : index
    %c0_168 = arith.constant 0 : index
    %c0_169 = arith.constant 0 : index
    %200 = vector.load %arg10[%c0_167, %c0_168, %c0_169] : memref<2x1x32xf32, #tpu.memory_space<vmem>>, vector<1x1x32xf32>
    %201 = vector.shape_cast %200 : vector<1x1x32xf32> to vector<1x32xf32>
    %202 = arith.truncf %195 : vector<16x32xf32> to vector<16x32xbf16>
    %cst_170 = arith.constant dense<0.000000e+00> : vector<16x32xf32>
    %203 = tpu.matmul %202, %199, %cst_170 {dimension_numbers = #tpu.dot_dimension_numbers<[1], [0], [0], [1], [0, 0, 1, 1], [], []>} : vector<16x32xbf16>, vector<32x32xbf16>, vector<16x32xf32> -> vector<16x32xf32>
    %204 = arith.truncf %197 : vector<16x32xf32> to vector<16x32xbf16>
    %cst_171 = arith.constant dense<0.000000e+00> : vector<16x32xf32>
    %205 = tpu.matmul %204, %199, %cst_171 {dimension_numbers = #tpu.dot_dimension_numbers<[1], [0], [0], [1], [0, 0, 1, 1], [], []>} : vector<16x32xbf16>, vector<32x32xbf16>, vector<16x32xf32> -> vector<16x32xf32>
    %c0_172 = arith.constant 0 : index
    %c0_173 = arith.constant 0 : index
    %c0_174 = arith.constant 0 : index
    %206 = vector.load %arg4[%c0_172, %c0_173, %c0_174] : memref<2x16x1xf32, #tpu.memory_space<vmem>>, vector<1x16x1xf32>
    %207 = vector.shape_cast %206 : vector<1x16x1xf32> to vector<16x1xf32>
    %208 = vector.broadcast %207 : vector<16x1xf32> to vector<16x32xf32>
    %209 = arith.mulf %208, %203 : vector<16x32xf32>
    %c0_175 = arith.constant 0 : index
    %c0_176 = arith.constant 0 : index
    %c0_177 = arith.constant 0 : index
    %210 = vector.load %arg2[%c0_175, %c0_176, %c0_177] : memref<2x16x16xbf16, #tpu.memory_space<vmem>>, vector<1x16x16xbf16>
    %211 = vector.shape_cast %210 : vector<1x16x16xbf16> to vector<16x16xbf16>
    %212 = arith.truncf %205 : vector<16x32xf32> to vector<16x32xbf16>
    %cst_178 = arith.constant dense<0.000000e+00> : vector<16x32xf32>
    %213 = tpu.matmul %211, %212, %cst_178 {dimension_numbers = #tpu.dot_dimension_numbers<[1], [0], [0], [1], [0, 0, 1, 1], [], []>} : vector<16x16xbf16>, vector<16x32xbf16>, vector<16x32xf32> -> vector<16x32xf32>
    %214 = arith.addf %209, %213 : vector<16x32xf32>
    %215 = vector.broadcast %201 : vector<1x32xf32> to vector<16x32xf32>
    %216 = arith.addf %214, %215 : vector<16x32xf32>
    %c0_179 = arith.constant 0 : index
    %c0_180 = arith.constant 0 : index
    %c0_181 = arith.constant 0 : index
    %217 = vector.load %arg5[%c0_179, %c0_180, %c0_181] : memref<2x16x1xf32, #tpu.memory_space<vmem>>, vector<1x16x1xf32>
    %218 = vector.shape_cast %217 : vector<1x16x1xf32> to vector<16x1xf32>
    %219 = vector.broadcast %218 : vector<16x1xf32> to vector<16x32xf32>
    %220 = arith.mulf %219, %205 : vector<16x32xf32>
    %c0_182 = arith.constant 0 : index
    %c0_183 = arith.constant 0 : index
    %c0_184 = arith.constant 0 : index
    %221 = vector.load %arg3[%c0_182, %c0_183, %c0_184] : memref<2x16x16xbf16, #tpu.memory_space<vmem>>, vector<1x16x16xbf16>
    %222 = vector.shape_cast %221 : vector<1x16x16xbf16> to vector<16x16xbf16>
    %223 = arith.truncf %203 : vector<16x32xf32> to vector<16x32xbf16>
    %cst_185 = arith.constant dense<0.000000e+00> : vector<16x32xf32>
    %224 = tpu.matmul %222, %223, %cst_185 {dimension_numbers = #tpu.dot_dimension_numbers<[1], [0], [0], [1], [0, 0, 1, 1], [], []>} : vector<16x16xbf16>, vector<16x32xbf16>, vector<16x32xf32> -> vector<16x32xf32>
    %225 = arith.addf %220, %224 : vector<16x32xf32>
    %226 = vector.broadcast %201 : vector<1x32xf32> to vector<16x32xf32>
    %227 = arith.addf %225, %226 : vector<16x32xf32>
    %228 = vector.broadcast %2 : f32 to vector<16x32xf32>
    %229 = arith.mulf %228, %195 : vector<16x32xf32>
    %230 = arith.addf %229, %216 : vector<16x32xf32>
    %c0_186 = arith.constant 0 : index
    %c0_187 = arith.constant 0 : index
    %c0_188 = arith.constant 0 : index
    %231 = vector.load %arg11[%c0_186, %c0_187, %c0_188] : memref<3x16x32xf32, #tpu.memory_space<vmem>>, vector<1x16x32xf32>
    %232 = vector.shape_cast %231 : vector<1x16x32xf32> to vector<16x32xf32>
    %233 = vector.shape_cast %230 : vector<16x32xf32> to vector<1x16x32xf32>
    tpu.vector_store %arg11[%c0_186, %c0_187, %c0_188], %233 {strides = array<i32>} : memref<3x16x32xf32, #tpu.memory_space<vmem>>, vector<1x16x32xf32>,
    %234 = vector.broadcast %2 : f32 to vector<16x32xf32>
    %235 = arith.mulf %234, %197 : vector<16x32xf32>
    %236 = arith.addf %235, %227 : vector<16x32xf32>
    %c1_189 = arith.constant 1 : index
    %c0_190 = arith.constant 0 : index
    %c0_191 = arith.constant 0 : index
    %237 = vector.load %arg11[%c1_189, %c0_190, %c0_191] : memref<3x16x32xf32, #tpu.memory_space<vmem>>, vector<1x16x32xf32>
    %238 = vector.shape_cast %237 : vector<1x16x32xf32> to vector<16x32xf32>
    %239 = vector.shape_cast %236 : vector<16x32xf32> to vector<1x16x32xf32>
    tpu.vector_store %arg11[%c1_189, %c0_190, %c0_191], %239 {strides = array<i32>} : memref<3x16x32xf32, #tpu.memory_space<vmem>>, vector<1x16x32xf32>,
    %c0_192 = arith.constant 0 : index
    %c0_193 = arith.constant 0 : index
    %c0_194 = arith.constant 0 : index
    %240 = vector.load %arg6[%c0_192, %c0_193, %c0_194] : memref<3x16x32xf32, #tpu.memory_space<vmem>>, vector<3x16x32xf32>
    %241 = vector.broadcast %0 : f32 to vector<3x16x32xf32>
    %242 = arith.mulf %241, %240 : vector<3x16x32xf32>
    %c0_195 = arith.constant 0 : index
    %c0_196 = arith.constant 0 : index
    %c0_197 = arith.constant 0 : index
    %243 = vector.load %arg11[%c0_195, %c0_196, %c0_197] : memref<3x16x32xf32, #tpu.memory_space<vmem>>, vector<3x16x32xf32>
    %244 = vector.broadcast %1 : f32 to vector<3x16x32xf32>
    %245 = arith.mulf %244, %243 : vector<3x16x32xf32>
    %246 = arith.addf %242, %245 : vector<3x16x32xf32>
    %c0_198 = arith.constant 0 : index
    %c0_199 = arith.constant 0 : index
    %c0_200 = arith.constant 0 : index
    %247 = vector.load %arg11[%c0_198, %c0_199, %c0_200] : memref<3x16x32xf32, #tpu.memory_space<vmem>>, vector<3x16x32xf32>
    tpu.vector_store %arg11[%c0_198, %c0_199, %c0_200], %246 {strides = array<i32>} : memref<3x16x32xf32, #tpu.memory_space<vmem>>, vector<3x16x32xf32>,
    return
  }
}

</mosaic_0001>

<bundles_post_ra>
// kernel: _mee_fused_call.1
= control target key start
LH: loop header
LB: loop body
LE: loop exit
PB: predicated region body
PF: predicated region fallthrough
CT: control target
= control target key end

     0   :  { %16 = vsyncpa [#allocation5], 0  ;;  %s1713_s0 = inlined_call_operand.hbm [shape: f32[3], index: 0, kind: input, shape index: {}]   ;;  %s1714_s1 = inlined_call_operand.hbm [shape: bf16[3,16,16], index: 1, kind: input, shape index: {}]   ;;  %s1715_s2 = inlined_call_operand.vmem [shape: bf16[2,16,16], index: 2, kind: input, shape index: {}]   ;;  %s1716_s3 = inlined_call_operand.hbm [shape: bf16[2,16,16], index: 3, kind: input, shape index: {}]   ;;  %s1717_s4 = inlined_call_operand.vmem [shape: f32[2,16,1], index: 4, kind: input, shape index: {}]   ;;  %s1718_s5 = inlined_call_operand.vmem [shape: f32[2,16,1], index: 5, kind: input, shape index: {}]   ;;  %s1719_s6 = inlined_call_operand.vmem [shape: f32[3,16,32], index: 6, kind: input, shape index: {}]   ;;  %s1720_s7 = inlined_call_operand.hbm [shape: bf16[3,32,32], index: 7, kind: input, shape index: {}]   ;;  %s1721_s8 = inlined_call_operand.vmem [shape: f32[3,1,32], index: 8, kind: input, shape index: {}]   ;;  %s1722_s9 = inlined_call_operand.hbm [shape: bf16[2,32,32], index: 9, kind: input, shape index: {}]   ;;  %s1723_s10 = inlined_call_operand.vmem [shape: f32[2,1,32], index: 10, kind: input, shape index: {}]   ;;  %s1724_s11 = inlined_call_operand.hbm [shape: f32[3,16,32], index: 11, kind: output, shape index: {}]  }
   0x1   :  { %17 = vsyncpa [#allocation3], 0 }
   0x2   :  { %18 = vsyncpa [#allocation8], 0 }
   0x3   :  { %19 = vsyncpa [#allocation11], 0 }
   0x4   :  { %20 = vsyncpa [#allocation4], 0  ;;  %s49_s19 = sshll.u32 %s1716_s3, 4  ;;  %s1369_s20 = smov [#allocation7]   ;;  %s50_s19 = int_to_ptr.hbm [resolvable:$true] %s49_s19 }
   0x5   :  { %s51_s21 = sshll.u32 %s1369_s20, 4  ;;  %s26_s24 = sshll.u32 %s1713_s0, 4  ;;  %s52_s21 = int_to_ptr.vmem [resolvable:$true] %s51_s21  ;;  %s27_s24 = int_to_ptr.hbm [resolvable:$true] %s26_s24 }
   0x6   :  { %s1370_s25 = smov 64   ;;  %s1371_s26 = smov 4  }
   0x7   :  { %57 = dma.hbm_to_vmem [thread:$0]  %s50_s19, 256, %s52_s21, [#allocation8], %s1370_s25, %s1370_s25, %s1371_s26  }
   0x8   :  { %s1372_s27 = smov [#allocation2]   ;;  %s34_s30 = sshll.u32 %s1714_s1, 4  ;;  %s35_s30 = int_to_ptr.hbm [resolvable:$true] %s34_s30 }
   0x9   :  { %29 = dma.hbm_to_smem %s27_s24, 16, %s1372_s27, [#allocation5]  }
   0xa   :  { %s1373_s3 = smov [#allocation6]   ;;  %s68_s15 = sshll.u32 %s1720_s7, 4  ;;  %s69_s15 = int_to_ptr.hbm [resolvable:$true] %s68_s15 }
   0xb   :  { %s36_s12 = sshll.u32 %s1373_s3, 4  ;;  %s1374_s0 = smov [#allocation9]   ;;  %s37_s12 = int_to_ptr.vmem [resolvable:$true] %s36_s12 }
   0xc   :  { %42 = dma.hbm_to_vmem [thread:$0]  %s35_s30, 384, %s37_s12, [#allocation3], %s1370_s25, %s1370_s25, %s1371_s26  }
   0xd   :  { %s70_s16 = sshll.u32 %s1374_s0, 4  ;;  %s83_s19 = sshll.u32 %s1722_s9, 4  ;;  %s71_s16 = int_to_ptr.vmem [resolvable:$true] %s70_s16  ;;  %s84_s19 = int_to_ptr.hbm [resolvable:$true] %s83_s19 }
   0xe   :  { %76 = dma.hbm_to_vmem [thread:$0]  %s69_s15, 768, %s71_s16, [#allocation8], %s1370_s25, %s1370_s25, %s1371_s26  }
   0xf   :  { %s1375_s1 = smov [#allocation10]  }
  0x10   :  { %s85_s20 = sshll.u32 %s1375_s1, 4  ;;  %s86_s20 = int_to_ptr.vmem [resolvable:$true] %s85_s20 }
  0x11   :  { %91 = dma.hbm_to_vmem [thread:$0]  %s84_s19, 512, %s86_s20, [#allocation11], %s1370_s25, %s1370_s25, %s1371_s26  }
  0x12   :  { %1359 = dma.done.wait [#allocation5], 16  }
  0x13   :  { %1360 = vsyncadd [#allocation5], 4294967280 }
  0x14   :  { %1361 = dma.done.wait [#allocation3], 384  }
  0x15   :  { %1362 = vsyncadd [#allocation3], 4294966912 }
  0x16   :  { %1363 = dma.done.wait [#allocation8], 1024  }
  0x17   :  { %1364 = vsyncadd [#allocation8], 4294966272 }
  0x18   :  { %1365 = dma.done.wait [#allocation11], 512  }
  0x19   :  { %1366 = vsyncadd [#allocation11], 4294966784 }
  0x1a   :  { %114 = sfence }
  0x1b   :  { %v1458_v0 = vld [vmem:[%s1719_s6] sm:$0xff]  ;;  %v1463_v1 = vld [vmem:[%s1719_s6 + $0x8] sm:$0xff]  ;;  %vm125_vm0 = vcmask 261120   ;;  %v1468_v2 = vld [vmem:[%s1719_s6 + $0x10] sm:$0xff]  ;;  %vm142_vm1 = vcmask 130048   ;;  %v1376_v31 = vmov 0  }
  0x1c   :  { %126 = vst.msk [vmem:[#allocation12] sm:$0xff] %vm125_vm0, %v1458_v0  ;;  %v1475_v3 = vld [vmem:[%s1719_s6 + $0x18] sm:$0xff]  ;;  %v1181_v9 = vld [vmem:[#allocation6] sm:$0xff]  ;;  %v1184_v11 = vld [vmem:[#allocation6 + $0x8] sm:$0xff]  ;;  %1217 = vset.pattern.permute.xlu0 %v1376_v31  ;;  %1218 = vset.pattern.permute.xlu1 %v1376_v31  ;;  %s1042_s26 = sld [smem:[#allocation2 + $0x2]]  ;;  %s1025_s21 = sshll.u32 %s1724_s11, 4  ;;  %s1026_s21 = int_to_ptr.hbm [resolvable:$true] %s1025_s21 }
  0x1d   :  { %127 = vst.msk [vmem:[#allocation12 + $0x8] sm:$0xff] %vm125_vm0, %v1463_v1  ;;  %v1183_v12 = vld [vmem:[#allocation9 + $0x8] sm:$0xff]  ;;  %v1182_v13 = vld [vmem:[#allocation9] sm:$0xff]  ;;  %v1186_v14 = vld [vmem:[#allocation9 + $0x18] sm:$0xff]  ;;  %1219 = vset.pattern.permute.xlu2 %v1376_v31  ;;  %s116_s15 = sld [smem:[#allocation2]]  ;;  %s1378_s9 = smov 128  }
  0x1e   :  { %128 = vst.msk [vmem:[#allocation12 + $0x10] sm:$0xff] %vm125_vm0, %v1468_v2  ;;  %190 = vmatpush.bf16.msra.mxu1 %v1183_v12  ;;  %v1488_v15 = vld [vmem:[%s1719_s6 + $0x20] sm:$0xff]  ;;  %v1493_v16 = vld [vmem:[%s1719_s6 + $0x28] sm:$0xff]  ;;  %261 = vmatpush.bf16.msra.mxu3 %v1186_v14  ;;  %v1185_v17 = vld [vmem:[#allocation9 + $0x10] sm:$0xff]  ;;  %s1041_s0 = sld [smem:[#allocation2 + $0x1]]  ;;  %s1379_s22 = smov 8  }
  0x1f   :  { %129 = vst.msk [vmem:[#allocation12 + $0x18] sm:$0xff] %vm125_vm0, %v1475_v3  ;;  %v1187_v21 = vld [vmem:[#allocation6 + $0x10] sm:$0xff]  ;;  %v1191_v30 = vld [vmem:[#allocation10 + $0x8] sm:$0xff]  ;;  %v1188_v33 = vld [vmem:[#allocation9 + $0x20] sm:$0xff] }
  0x20   :  { %130 = vst.msk [vmem:[#allocation12 + $0x20] sm:$0xff] %vm125_vm0, %v1488_v15  ;;  %v1189_v29 = vld [vmem:[#allocation9 + $0x28] sm:$0xff]  ;;  %v1505_v32 = vld [vmem:[%s1718_s5] sm:$0xff]  ;;  %v1190_v34 = vld [vmem:[#allocation10] sm:$0xff] }
  0x21   :  { %131 = vst.msk [vmem:[#allocation12 + $0x28] sm:$0xff] %vm125_vm0, %v1493_v16  ;;  %449 = vperm.xlu0 %1217, %v1505_v32   ;;  %v1127_v37 = vld [vmem:[%s1718_s5 + $0x10] sm:$0xff]  ;;  %v446_v38 = vld [vmem:[%s1718_s5 + $0x8] sm:$0xff]  ;;  %v1220_v39 = vld [vmem:[%s1721_s8] ss:$0 sm:$0xff] }
  0x22   :  { %191 = vmatpush.bf16.msra.mxu1 %v1182_v13  ;;  %262 = vmatpush.bf16.msra.mxu3 %v1185_v17  ;;  %v1521_v40 = vld [vmem:[%s1718_s5 + $0x18] sm:$0xff]  ;;  %v399_v41 = vld [vmem:[%s1717_s4] sm:$0xff]  ;;  %v400_v44 = vld [vmem:[%s1717_s4 + $0x8] sm:$0xff]  ;;  %v1586_v31 = vstv %s1042_s26 }
  0x23   :  { %v132_v4 = vld [vmem:[#allocation12] sm:$0xff]  ;;  %613 = vperm.xlu1 %1218, %v1127_v37   ;;  %v1221_v47 = vld [vmem:[%s1721_s8 + $0x1] ss:$0 sm:$0xff]  ;;  %v1222_v58 = vld [vmem:[%s1721_s8 + $0x2] ss:$0 sm:$0xff] }
  0x24   :  { %v133_v5 = vld [vmem:[#allocation12 + $0x8] sm:$0xff]  ;;  %v1146_v61 = vld [vmem:[%s1717_s4 + $0x18] sm:$0xff] }
  0x25   :  { %v136_v6 = vpack.c.bf16 %v133_v5, %v132_v4  ;;  %v201_v7 = vld [vmem:[#allocation12 + $0x10] sm:$0xff]  ;;  %v1195_v4 = vld [vmem:[#allocation10 + $0x18] sm:$0xff]  ;;  %v1193_v12 = vld [vmem:[#allocation7] sm:$0xff] }
  0x26   :  { %v202_v8 = vld [vmem:[#allocation12 + $0x18] sm:$0xff]  ;;  %373 = vmatpush.bf16.msrb.mxu1 %v1191_v30  ;;  %391 = vmatpush.bf16.msrb.mxu3 %v1191_v30  ;;  %v1194_v5 = vld [vmem:[#allocation10 + $0x10] sm:$0xff] }
  0x27   :  { %153 = vmatpush.bf16.msra.mxu0 %v136_v6  ;;  %v206_v10 = vpack.c.bf16 %v202_v8, %v201_v7  ;;  %v272_v18 = vld [vmem:[#allocation12 + $0x20] sm:$0xff] }
  0x28   :  { %v273_v19 = vld [vmem:[#allocation12 + $0x28] sm:$0xff] }
  0x29   :  { %222 = vmatpush.bf16.msra.mxu2 %v206_v10  ;;  %v277_v20 = vpack.c.bf16 %v273_v19, %v272_v18  ;;  %454 = vperm.xlu0 %1217, %v446_v38   ;;  %v1192_v18 = vld [vmem:[%s1715_s2] sm:$0xff] }
  0x2a   :  { %1047 = vmatmul.msk.bf16.vlgmr.msra.gmra.mxu0 %vm142_vm1, %v1181_v9  ;;  %374 = vmatpush.bf16.msrb.mxu1 %v1190_v34 }
  0x2b   :  { %293 = vmatpush.bf16.msrb.mxu0 %v277_v20  ;;  %392 = vmatpush.bf16.msrb.mxu3 %v1190_v34 }
  0x2c   :  { %1061 = vmatmul.msk.bf16.vlgmr.msra.gmra.mxu2 %vm142_vm1, %v1184_v11  ;;  %618 = vperm.xlu1 %1218, %v1521_v40  }
  0x2d   :  { %332 = vmatpush.bf16.msrb.mxu2 %v1189_v29 }
  0x31   :  { %333 = vmatpush.bf16.msrb.mxu2 %v1188_v33  ;;  %403 = vperm.xlu0 %1217, %v399_v41  }
  0x34   :  { %408 = vperm.xlu1 %1218, %v400_v44  }
  0x39   :  { %731 = vperm.xlu0 %1217, %v1146_v61  }
  0x3a   :  { %1076 = vmatmul.msk.bf16.vlgmr.msrb.gmra.mxu0 %vm142_vm1, %v1187_v21 }
  0x3c   :  { %772 = vperm.xlu1 %1218, %v1127_v37  }
  0x41   :  { %884 = vperm.xlu0 %1217, %v399_v41  }
  0x44   :  { %889 = vperm.xlu1 %1218, %v400_v44  }
  0x49   :  { %935 = vperm.xlu0 %1217, %v446_v38  }
  0x93   :  { %v450_v20 = vpop.permute.xlu0 %449 }
  0xa7   :  { %v155_v22 = vpop.f32.mrf.mxu0 }
  0xaf   :  { %v224_v23 = vpop.f32.mrf.mxu2  ;;  %v157_v24 = vpop.f32.mrf.mxu0 }
  0xb0   :  { %v160_v25 = vpack.c.bf16 %v157_v24, %v155_v22  ;;  %v1118_v24 = vld [vmem:[%s1717_s4 + $0x10] sm:$0xff] }
  0xb1   :  { %565 = vperm.xlu2 %1219, %v1118_v24  }
  0xb2   :  { %1056 = vmatmul.msk.bf16.vlgmr.msra.gmra.mxu1 %vm125_vm0, %v160_v25  ;;  %v1580_v25 = vpop.permute.xlu1 %613 }
  0xb3   :  { %534 = vmatpush.bf16.msra.mxu1 %v1195_v4 }
  0xb7   :  { %v226_v26 = vpop.f32.mrf.mxu2  ;;  %v295_v28 = vpop.f32.mrf.mxu0  ;;  %535 = vmatpush.bf16.msra.mxu1 %v1194_v5 }
  0xb8   :  { %v229_v27 = vpack.c.bf16 %v226_v26, %v224_v23  ;;  %v1196_v23 = vld [vmem:[%s1715_s2 + $0x8] sm:$0xff] }
  0xb9   :  { %570 = vperm.xlu2 %1219, %v1146_v61  }
  0xba   :  { %1071 = vmatmul.msk.bf16.vlgmr.msra.gmra.mxu3 %vm125_vm0, %v229_v27  ;;  %v1223_v27 = vld [vmem:[%s1723_s10] ss:$0 sm:$0xff]  ;;  %v1590_v37 = vpop.permute.xlu1 %618 }
  0xbb   :  { %552 = vmatpush.bf16.msra.mxu3 %v1195_v4 }
  0xbf   :  { %v297_v35 = vpop.f32.mrf.mxu0  ;;  %553 = vmatpush.bf16.msra.mxu3 %v1194_v5  ;;  %v1202_v5 = vld [vmem:[#allocation10] sm:$0xff] }
  0xc0   :  { %v300_v36 = vpack.c.bf16 %v297_v35, %v295_v28  ;;  %v455_v28 = vpop.permute.xlu0 %454 }
  0xc1   :  { %726 = vperm.xlu2 %1219, %v1118_v24  }
  0xc2   :  { %1086 = vmatmul.msk.bf16.vlgmr.msrb.gmra.mxu2 %vm125_vm0, %v300_v36 }
  0xc8   :  { %v404_v41 = vpop.permute.xlu0 %403 }
  0xc9   :  { %777 = vperm.xlu2 %1219, %v1521_v40   ;;  %v1203_v40 = vld [vmem:[#allocation10 + $0x8] sm:$0xff] }
  0xd1   :  { %930 = vperm.xlu2 %1219, %v1505_v32  }
 0x10b   :  { %v566_v4 = vpop.permute.xlu2 %565 }
 0x12f   :  { %v193_v42 = vpop.f32.mrf.mxu1 }
 0x130   :  { %v194_v43 = vadd.f32 %v1220_v39, %v193_v42 }
 0x132   :  { %198 = vst.msk [vmem:[#allocation12] sm:$0xff] %vm125_vm0, %v194_v43 }
 0x137   :  { %v195_v45 = vpop.f32.mrf.mxu1 }
 0x138   :  { %v196_v46 = vadd.f32 %v1220_v39, %v195_v45 }
 0x139   :  { %v1536_v50 = vld [vmem:[#allocation12] sm:$0xff] }
 0x13a   :  { %199 = vst.msk [vmem:[#allocation12 + $0x8] sm:$0xff] %vm125_vm0, %v196_v46 }
 0x13d   :  { %v264_v48 = vpop.f32.mrf.mxu3 }
 0x13e   :  { %v265_v49 = vadd.f32 %v1221_v47, %v264_v48 }
 0x140   :  { %269 = vst.msk [vmem:[#allocation12 + $0x10] sm:$0xff] %vm125_vm0, %v265_v49  ;;  %v489_v49 = vmul.f32 %v1586_v31, %v1536_v50 }
 0x141   :  { %v1538_v51 = vld [vmem:[#allocation12 + $0x8] sm:$0xff] }
 0x142   :  { %v351_v52 = vpack.c.bf16 %v1538_v51, %v1536_v50  ;;  %v490_v61 = vmul.f32 %v1586_v31, %v1538_v51  ;;  %v1199_v50 = vld [vmem:[#allocation10 + $0x18] sm:$0xff] }
 0x144   :  { %1095 = vmatmul.msk.bf16.vlgmr.msrb.gmra.mxu1 %vm125_vm0, %v351_v52  ;;  %v409_v52 = vpop.permute.xlu1 %408 }
 0x145   :  { %v266_v53 = vpop.f32.mrf.mxu3  ;;  %v335_v59 = vpop.f32.mrf.mxu2  ;;  %696 = vmatpush.bf16.msrb.mxu1 %v1199_v50 }
 0x146   :  { %v267_v54 = vadd.f32 %v1221_v47, %v266_v53  ;;  %v336_v60 = vadd.f32 %v1222_v58, %v335_v59 }
 0x147   :  { %v344_v55 = vld [vmem:[#allocation12 + $0x10] sm:$0xff] }
 0x148   :  { %270 = vst.msk [vmem:[#allocation12 + $0x18] sm:$0xff] %vm125_vm0, %v267_v54  ;;  %v495_v34 = vmul.f32 %v1586_v31, %v344_v55 }
 0x149   :  { %340 = vst.msk [vmem:[#allocation12 + $0x20] sm:$0xff] %vm125_vm0, %v336_v60 }
 0x14d   :  { %v337_v62 = vpop.f32.mrf.mxu2 }
 0x14e   :  { %v338_v63 = vadd.f32 %v1222_v58, %v337_v62 }
 0x14f   :  { %v1544_v56 = vld [vmem:[#allocation12 + $0x18] sm:$0xff] }
 0x150   :  { %v381_v57 = vpack.c.bf16 %v1544_v56, %v344_v55  ;;  %341 = vst.msk [vmem:[#allocation12 + $0x28] sm:$0xff] %vm125_vm0, %v338_v63  ;;  %v1556_v6 = vld [vmem:[#allocation12 + $0x20] sm:$0xff]  ;;  %v496_v43 = vmul.f32 %v1586_v31, %v1544_v56  ;;  %v1198_v63 = vld [vmem:[#allocation10 + $0x10] sm:$0xff] }
 0x151   :  { %697 = vmatpush.bf16.msrb.mxu1 %v1198_v63 }
 0x152   :  { %1096 = vmatmul.msk.bf16.vlgmr.msrb.gmra.mxu3 %vm125_vm0, %v381_v57 }
 0x153   :  { %714 = vmatpush.bf16.msrb.mxu3 %v1199_v50  ;;  %v1225_v50 = vld [vmem:[%s1723_s10 + $0x1] ss:$0 sm:$0xff] }
 0x157   :  { %v1558_v7 = vld [vmem:[#allocation12 + $0x28] sm:$0xff]  ;;  %715 = vmatpush.bf16.msrb.mxu3 %v1198_v63 }
 0x158   :  { %v542_v8 = vpack.c.bf16 %v1558_v7, %v1556_v6 }
 0x162   :  { %1117 = vmatmul.msk.bf16.vlgmr.msra.gmra.mxu3 %vm125_vm0, %v542_v8 }
 0x163   :  { %872 = vmatpush.bf16.msra.mxu3 %v1203_v40 }
 0x167   :  { %873 = vmatpush.bf16.msra.mxu3 %v1202_v5 }
 0x1c1   :  { %v376_v9 = vpop.f32.mrf.mxu1 }
 0x1c2   :  { %v411_v44 = vmul.f32 %v404_v41, %v376_v9 }
 0x1c9   :  { %v378_v10 = vpop.f32.mrf.mxu1 }
 0x1ca   :  { %v461_v11 = vpack.c.bf16 %v378_v10, %v376_v9  ;;  %v412_v54 = vmul.f32 %v409_v52, %v378_v10  ;;  %v1224_v10 = vld [vmem:[%s1723_s10 + $0x1] ss:$0 sm:$0xff] }
 0x1cc   :  { %477 = vmatpush.bf16.msra.mxu2 %v461_v11 }
 0x1cf   :  { %1106 = vmatmul.msk.bf16.vlgmr.msra.gmra.mxu2 %vm142_vm1, %v1193_v12 }
 0x1d5   :  { %v394_v13 = vpop.f32.mrf.mxu3 }
 0x1d6   :  { %v457_v26 = vmul.f32 %v450_v20, %v394_v13 }
 0x1dd   :  { %v396_v14 = vpop.f32.mrf.mxu3 }
 0x1de   :  { %v415_v17 = vpack.c.bf16 %v396_v14, %v394_v13  ;;  %v458_v36 = vmul.f32 %v455_v28, %v396_v14  ;;  %v571_v13 = vpop.permute.xlu2 %570 }
 0x1e0   :  { %431 = vmatpush.bf16.msra.mxu0 %v415_v17 }
 0x1e3   :  { %1101 = vmatmul.msk.bf16.vlgmr.msra.gmra.mxu0 %vm142_vm1, %v1192_v18 }
 0x1e5   :  { %v1568_v19 = vpop.f32.mrf.mxu3 }
 0x1ed   :  { %v1570_v21 = vpop.f32.mrf.mxu3 }
 0x1ee   :  { %v578_v22 = vpack.c.bf16 %v1570_v21, %v1568_v19 }
 0x1f0   :  { %594 = vmatpush.bf16.msrb.mxu0 %v578_v22 }
 0x1f3   :  { %1126 = vmatmul.msk.bf16.vlgmr.msrb.gmra.mxu0 %vm142_vm1, %v1196_v23  ;;  %v1197_v23 = vld [vmem:[#allocation7 + $0x8] sm:$0xff] }
 0x252   :  { %v479_v29 = vpop.f32.mrf.mxu2 }
 0x253   :  { %v484_v30 = vadd.f32 %v479_v29, %v457_v26 }
 0x255   :  { %v486_v33 = vadd.f32 %v1223_v27, %v484_v30 }
 0x257   :  { %v497_v35 = vadd.f32 %v495_v34, %v486_v33 }
 0x259   :  { %499 = vst.msk [vmem:[#allocation12 + $0x10] sm:$0xff] %vm125_vm0, %v497_v35 }
 0x25a   :  { %v481_v38 = vpop.f32.mrf.mxu2 }
 0x25b   :  { %v485_v39 = vadd.f32 %v481_v38, %v458_v36  ;;  %v621_v38 = vmul.f32 %v1580_v25, %v1568_v19  ;;  %v660_v19 = vmul.f32 %v1558_v7, %v1586_v31 }
 0x25d   :  { %v487_v42 = vadd.f32 %v1223_v27, %v485_v39 }
 0x25f   :  { %v498_v45 = vadd.f32 %v496_v43, %v487_v42  ;;  %v659_v43 = vmul.f32 %v1556_v6, %v1586_v31 }
 0x260   :  { %v433_v46 = vpop.f32.mrf.mxu0  ;;  %v501_v57 = vld [vmem:[#allocation12 + $0x10] sm:$0xff] }
 0x261   :  { %500 = vst.msk [vmem:[#allocation12 + $0x18] sm:$0xff] %vm125_vm0, %v498_v45  ;;  %v438_v47 = vadd.f32 %v433_v46, %v411_v44  ;;  %v653_v12 = vmul.f32 %v501_v57, %v1586_v31  ;;  %v727_v45 = vpop.permute.xlu2 %726  ;;  %v622_v46 = vmul.f32 %v1590_v37, %v1570_v21 }
 0x263   :  { %v443_v48 = vadd.f32 %v1223_v27, %v438_v47 }
 0x265   :  { %v491_v53 = vadd.f32 %v489_v49, %v443_v48 }
 0x267   :  { %493 = vst.msk [vmem:[#allocation12] sm:$0xff] %vm125_vm0, %v491_v53 }
 0x268   :  { %v435_v55 = vpop.f32.mrf.mxu0  ;;  %v502_v58 = vld [vmem:[#allocation12 + $0x18] sm:$0xff] }
 0x269   :  { %v439_v56 = vadd.f32 %v435_v55, %v412_v54  ;;  %v512_v59 = vpack.c.bf16 %v502_v58, %v501_v57  ;;  %v1201_v55 = vld [vmem:[#allocation7 + $0x8] sm:$0xff] }
 0x26b   :  { %v444_v60 = vadd.f32 %v1223_v27, %v439_v56  ;;  %1116 = vmatmul.msk.bf16.vlgmr.msra.gmra.mxu1 %vm125_vm0, %v512_v59  ;;  %v654_v27 = vmul.f32 %v502_v58, %v1586_v31 }
 0x26c   :  { %854 = vmatpush.bf16.msra.mxu1 %v1203_v40 }
 0x26d   :  { %v492_v62 = vadd.f32 %v490_v61, %v444_v60  ;;  %v773_v60 = vpop.permute.xlu1 %772 }
 0x26e   :  { %v1621_v35 = vld [vmem:[#allocation12] sm:$0xff] }
 0x26f   :  { %494 = vst.msk [vmem:[#allocation12 + $0x8] sm:$0xff] %vm125_vm0, %v492_v62 }
 0x270   :  { %v596_v8 = vpop.f32.mrf.mxu0  ;;  %855 = vmatpush.bf16.msra.mxu1 %v1202_v5  ;;  %v778_v5 = vpop.permute.xlu2 %777 }
 0x276   :  { %v1619_v34 = vld [vmem:[#allocation12 + $0x8] sm:$0xff] }
 0x277   :  { %v832_v36 = vpack.c.bf16 %v1619_v34, %v1621_v35 }
 0x278   :  { %v598_v18 = vpop.f32.mrf.mxu0 }
 0x2e8   :  { %v537_v51 = vpop.f32.mrf.mxu1 }
 0x2e9   :  { %v573_v9 = vmul.f32 %v566_v4, %v537_v51 }
 0x2eb   :  { %v601_v32 = vadd.f32 %v596_v8, %v573_v9 }
 0x2ed   :  { %v606_v11 = vadd.f32 %v1224_v10, %v601_v32 }
 0x2ef   :  { %v655_v14 = vadd.f32 %v653_v12, %v606_v11  ;;  %v1200_v11 = vld [vmem:[%s1715_s2 + $0x8] sm:$0xff] }
 0x2f0   :  { %v539_v17 = vpop.f32.mrf.mxu1 }
 0x2f1   :  { %657 = vst.msk [vmem:[#allocation12 + $0x10] sm:$0xff] %vm125_vm0, %v655_v14  ;;  %v574_v20 = vmul.f32 %v571_v13, %v539_v17  ;;  %v626_v22 = vpack.c.bf16 %v539_v17, %v537_v51  ;;  %v1652_v13 = vstv %s116_s15 }
 0x2f3   :  { %v602_v24 = vadd.f32 %v598_v18, %v574_v20  ;;  %642 = vmatpush.bf16.msrb.mxu2 %v626_v22  ;;  %v1655_v18 = vstv %s1041_s0  ;;  %v992_v20 = vmul.f32 %v1652_v13, %v1488_v15 }
 0x2f5   :  { %v607_v26 = vadd.f32 %v1224_v10, %v602_v24 }
 0x2f6   :  { %1133 = vmatmul.msk.bf16.vlgmr.msrb.gmra.mxu2 %vm142_vm1, %v1197_v23 }
 0x2f7   :  { %v656_v28 = vadd.f32 %v654_v27, %v607_v26  ;;  %v993_v27 = vmul.f32 %v1652_v13, %v1493_v16 }
 0x2f8   :  { %v1612_v29 = vld [vmem:[#allocation12 + $0x10] sm:$0xff] }
 0x2f9   :  { %658 = vst.msk [vmem:[#allocation12 + $0x18] sm:$0xff] %vm125_vm0, %v656_v28 }
 0x300   :  { %v1614_v30 = vld [vmem:[#allocation12 + $0x18] sm:$0xff] }
 0x301   :  { %v674_v33 = vpack.c.bf16 %v1614_v30, %v1612_v29 }
 0x303   :  { %1143 = vmatmul.msk.bf16.vlgmr.msrb.gmra.mxu1 %vm125_vm0, %v674_v33 }
 0x313   :  { %1169 = vmatmul.msk.bf16.vlgmr.msra.gmra.mxu1 %vm125_vm0, %v832_v36 }
 0x379   :  { %v644_v39 = vpop.f32.mrf.mxu2 }
 0x37a   :  { %v649_v41 = vadd.f32 %v644_v39, %v621_v38  ;;  %v1205_v38 = vld [vmem:[#allocation7] sm:$0xff] }
 0x37c   :  { %v651_v42 = vadd.f32 %v1224_v10, %v649_v41 }
 0x37e   :  { %v661_v44 = vadd.f32 %v659_v43, %v651_v42  ;;  %v811_v42 = vmul.f32 %v1612_v29, %v1586_v31 }
 0x380   :  { %663 = vst.msk [vmem:[#allocation12 + $0x20] sm:$0xff] %vm125_vm0, %v661_v44  ;;  %v699_v47 = vpop.f32.mrf.mxu1  ;;  %v732_v44 = vpop.permute.xlu0 %731 }
 0x381   :  { %v734_v48 = vmul.f32 %v727_v45, %v699_v47  ;;  %v646_v49 = vpop.f32.mrf.mxu2 }
 0x382   :  { %v650_v52 = vadd.f32 %v646_v49, %v622_v46  ;;  %v812_v49 = vmul.f32 %v1614_v30, %v1586_v31 }
 0x384   :  { %v652_v53 = vadd.f32 %v1224_v10, %v650_v52 }
 0x386   :  { %v662_v25 = vadd.f32 %v660_v19, %v652_v53 }
 0x387   :  { %v667_v21 = vld [vmem:[#allocation12 + $0x20] sm:$0xff] }
 0x388   :  { %664 = vst.msk [vmem:[#allocation12 + $0x28] sm:$0xff] %vm125_vm0, %v662_v25  ;;  %v701_v54 = vpop.f32.mrf.mxu1  ;;  %v817_v4 = vmul.f32 %v667_v21, %v1586_v31  ;;  %v885_v29 = vpop.permute.xlu0 %884 }
 0x389   :  { %v784_v6 = vpack.c.bf16 %v701_v54, %v699_v47  ;;  %v735_v45 = vmul.f32 %v732_v44, %v701_v54 }
 0x38b   :  { %800 = vmatpush.bf16.msra.mxu2 %v784_v6  ;;  %v931_v6 = vpop.permute.xlu2 %930 }
 0x38e   :  { %1160 = vmatmul.msk.bf16.vlgmr.msra.gmra.mxu2 %vm142_vm1, %v1201_v55 }
 0x38f   :  { %v668_v37 = vld [vmem:[#allocation12 + $0x28] sm:$0xff] }
 0x390   :  { %v1637_v57 = vpop.f32.mrf.mxu1  ;;  %v704_v58 = vpack.c.bf16 %v668_v37, %v667_v21  ;;  %v818_v17 = vmul.f32 %v668_v37, %v1586_v31  ;;  %v1226_v21 = vld [vmem:[%s1723_s10] ss:$0 sm:$0xff] }
 0x392   :  { %1144 = vmatmul.msk.bf16.vlgmr.msrb.gmra.mxu3 %vm125_vm0, %v704_v58 }
 0x398   :  { %v1640_v56 = vpop.f32.mrf.mxu1 }
 0x399   :  { %v942_v7 = vpack.c.bf16 %v1640_v56, %v1637_v57 }
 0x39b   :  { %958 = vmatpush.bf16.msrb.mxu2 %v942_v7  ;;  %v936_v7 = vpop.permute.xlu0 %935 }
 0x39e   :  { %1180 = vmatmul.msk.bf16.vlgmr.msrb.gmra.mxu2 %vm142_vm1, %v1205_v38  ;;  %v970_v38 = vmul.f32 %v1619_v34, %v1586_v31 }
 0x411   :  { %v802_v59 = vpop.f32.mrf.mxu2 }
 0x415   :  { %v717_v61 = vpop.f32.mrf.mxu3 }
 0x416   :  { %v780_v62 = vmul.f32 %v773_v60, %v717_v61 }
 0x418   :  { %v807_v63 = vadd.f32 %v802_v59, %v780_v62 }
 0x419   :  { %v804_v9 = vpop.f32.mrf.mxu2 }
 0x41a   :  { %v809_v40 = vadd.f32 %v1225_v50, %v807_v63  ;;  %v1204_v63 = vld [vmem:[%s1715_s2] sm:$0xff]  ;;  %s1377_s2 = smov [#allocation12]  }
 0x41b   :  { %s1023_s10 = sshll.u32 %s1377_s2, 4  ;;  %s1024_s10 = int_to_ptr.vmem [resolvable:$true] %s1023_s10 }
 0x41c   :  { %v819_v8 = vadd.f32 %v817_v4, %v809_v40 }
 0x41d   :  { %v719_v51 = vpop.f32.mrf.mxu3 }
 0x41e   :  { %821 = vst.msk [vmem:[#allocation12 + $0x20] sm:$0xff] %vm125_vm0, %v819_v8  ;;  %v738_v10 = vpack.c.bf16 %v719_v51, %v717_v61  ;;  %v781_v32 = vmul.f32 %v778_v5, %v719_v51  ;;  %v990_v8 = vmul.f32 %v1652_v13, %v1468_v2  ;;  %v892_v2 = vmul.f32 %v885_v29, %v1637_v57 }
 0x41f   :  { %v988_v57 = vmul.f32 %v1652_v13, %v1458_v0 }
 0x420   :  { %v808_v12 = vadd.f32 %v804_v9, %v781_v32  ;;  %754 = vmatpush.bf16.msra.mxu0 %v738_v10 }
 0x421   :  { %v960_v25 = vpop.f32.mrf.mxu2 }
 0x422   :  { %v810_v14 = vadd.f32 %v1225_v50, %v808_v12 }
 0x423   :  { %1153 = vmatmul.msk.bf16.vlgmr.msra.gmra.mxu0 %vm142_vm1, %v1200_v11  ;;  %v991_v11 = vmul.f32 %v1652_v13, %v1475_v3 }
 0x424   :  { %v820_v22 = vadd.f32 %v818_v17, %v810_v14 }
 0x425   :  { %v998_v23 = vld [vmem:[#allocation12 + $0x20] sm:$0xff] }
 0x426   :  { %v1005_v24 = vmul.f32 %v1655_v18, %v998_v23  ;;  %822 = vst.msk [vmem:[#allocation12 + $0x28] sm:$0xff] %vm125_vm0, %v820_v22 }
 0x428   :  { %v1011_v26 = vadd.f32 %v1005_v24, %v992_v20  ;;  %v969_v24 = vmul.f32 %v1621_v35, %v1586_v31 }
 0x429   :  { %v962_v61 = vpop.f32.mrf.mxu2 }
 0x42a   :  { %1017 = vst.msk [vmem:[#allocation12 + $0x20] sm:$0xff] %vm125_vm0, %v1011_v26 }
 0x42d   :  { %v999_v28 = vld [vmem:[#allocation12 + $0x28] sm:$0xff] }
 0x42e   :  { %v1006_v33 = vmul.f32 %v1655_v18, %v999_v28 }
 0x430   :  { %v1012_v36 = vadd.f32 %v1006_v33, %v993_v27  ;;  %v890_v27 = vpop.permute.xlu1 %889 }
 0x431   :  { %v893_v28 = vmul.f32 %v890_v27, %v1640_v56  ;;  %v989_v56 = vmul.f32 %v1652_v13, %v1463_v1 }
 0x432   :  { %1018 = vst.msk [vmem:[#allocation12 + $0x28] sm:$0xff] %vm125_vm0, %v1012_v36 }
 0x4a0   :  { %v756_v15 = vpop.f32.mrf.mxu0 }
 0x4a1   :  { %v761_v39 = vadd.f32 %v756_v15, %v734_v48 }
 0x4a3   :  { %v766_v41 = vadd.f32 %v1225_v50, %v761_v39 }
 0x4a5   :  { %v813_v43 = vadd.f32 %v811_v42, %v766_v41 }
 0x4a7   :  { %815 = vst.msk [vmem:[#allocation12 + $0x10] sm:$0xff] %vm125_vm0, %v813_v43 }
 0x4a8   :  { %v758_v16 = vpop.f32.mrf.mxu0 }
 0x4a9   :  { %v762_v46 = vadd.f32 %v758_v16, %v735_v45 }
 0x4ab   :  { %v767_v47 = vadd.f32 %v1225_v50, %v762_v46 }
 0x4ad   :  { %v814_v52 = vadd.f32 %v812_v49, %v767_v47 }
 0x4ae   :  { %v825_v53 = vld [vmem:[#allocation12 + $0x10] sm:$0xff] }
 0x4af   :  { %816 = vst.msk [vmem:[#allocation12 + $0x18] sm:$0xff] %vm125_vm0, %v814_v52  ;;  %v975_v30 = vmul.f32 %v825_v53, %v1586_v31 }
 0x4b6   :  { %v826_v48 = vld [vmem:[#allocation12 + $0x18] sm:$0xff] }
 0x4b7   :  { %v862_v19 = vpack.c.bf16 %v826_v48, %v825_v53  ;;  %v976_v5 = vmul.f32 %v826_v48, %v1586_v31 }
 0x4b9   :  { %1170 = vmatmul.msk.bf16.vlgmr.msra.gmra.mxu3 %vm125_vm0, %v862_v19 }
 0x53c   :  { %v875_v54 = vpop.f32.mrf.mxu3 }
 0x53d   :  { %v938_v55 = vmul.f32 %v931_v6, %v875_v54 }
 0x53f   :  { %v965_v37 = vadd.f32 %v960_v25, %v938_v55 }
 0x541   :  { %v967_v58 = vadd.f32 %v1226_v21, %v965_v37 }
 0x543   :  { %v977_v59 = vadd.f32 %v975_v30, %v967_v58 }
 0x544   :  { %v877_v60 = vpop.f32.mrf.mxu3 }
 0x545   :  { %979 = vst.msk [vmem:[#allocation12 + $0x10] sm:$0xff] %vm125_vm0, %v977_v59  ;;  %v896_v62 = vpack.c.bf16 %v877_v60, %v875_v54  ;;  %v939_v50 = vmul.f32 %v936_v7, %v877_v60 }
 0x547   :  { %v966_v40 = vadd.f32 %v962_v61, %v939_v50  ;;  %912 = vmatpush.bf16.msrb.mxu0 %v896_v62 }
 0x549   :  { %v968_v4 = vadd.f32 %v1226_v21, %v966_v40 }
 0x54a   :  { %1175 = vmatmul.msk.bf16.vlgmr.msrb.gmra.mxu0 %vm142_vm1, %v1204_v63 }
 0x54b   :  { %v978_v51 = vadd.f32 %v976_v5, %v968_v4 }
 0x54c   :  { %v996_v9 = vld [vmem:[#allocation12 + $0x10] sm:$0xff] }
 0x54d   :  { %v1003_v10 = vmul.f32 %v1655_v18, %v996_v9  ;;  %980 = vst.msk [vmem:[#allocation12 + $0x18] sm:$0xff] %vm125_vm0, %v978_v51 }
 0x54f   :  { %v1009_v32 = vadd.f32 %v1003_v10, %v990_v8 }
 0x551   :  { %1015 = vst.msk [vmem:[#allocation12 + $0x10] sm:$0xff] %vm125_vm0, %v1009_v32 }
 0x554   :  { %v997_v12 = vld [vmem:[#allocation12 + $0x18] sm:$0xff] }
 0x555   :  { %v1004_v14 = vmul.f32 %v1655_v18, %v997_v12 }
 0x557   :  { %v1010_v17 = vadd.f32 %v1004_v14, %v991_v11 }
 0x559   :  { %1016 = vst.msk [vmem:[#allocation12 + $0x18] sm:$0xff] %vm125_vm0, %v1010_v17 }
 0x5c7   :  { %v914_v20 = vpop.f32.mrf.mxu0 }
 0x5c8   :  { %v919_v22 = vadd.f32 %v914_v20, %v892_v2 }
 0x5ca   :  { %v924_v23 = vadd.f32 %v1226_v21, %v919_v22 }
 0x5cc   :  { %v971_v26 = vadd.f32 %v969_v24, %v924_v23 }
 0x5ce   :  { %973 = vst.msk [vmem:[#allocation12] sm:$0xff] %vm125_vm0, %v971_v26 }
 0x5cf   :  { %v916_v3 = vpop.f32.mrf.mxu0 }
 0x5d0   :  { %v920_v33 = vadd.f32 %v916_v3, %v893_v28 }
 0x5d2   :  { %v925_v36 = vadd.f32 %v1226_v21, %v920_v33 }
 0x5d4   :  { %v972_v15 = vadd.f32 %v970_v38, %v925_v36 }
 0x5d5   :  { %v994_v39 = vld [vmem:[#allocation12] sm:$0xff] }
 0x5d6   :  { %v1001_v41 = vmul.f32 %v1655_v18, %v994_v39  ;;  %974 = vst.msk [vmem:[#allocation12 + $0x8] sm:$0xff] %vm125_vm0, %v972_v15 }
 0x5d8   :  { %v1007_v35 = vadd.f32 %v1001_v41, %v988_v57 }
 0x5da   :  { %1013 = vst.msk [vmem:[#allocation12] sm:$0xff] %vm125_vm0, %v1007_v35 }
 0x5dd   :  { %v995_v31 = vld [vmem:[#allocation12 + $0x8] sm:$0xff] }
 0x5de   :  { %v1002_v0 = vmul.f32 %v1655_v18, %v995_v31 }
 0x5e0   :  { %v1008_v34 = vadd.f32 %v1002_v0, %v989_v56 }
 0x5e2   :  { %1014 = vst.msk [vmem:[#allocation12 + $0x8] sm:$0xff] %vm125_vm0, %v1008_v34 }
 0x5e3   :  { %1031 = dma.vmem_to_hbm [thread:$0]  %s1024_s10, 768, %s1026_s21, [#allocation4], %s1378_s9, %s1378_s9, %s1379_s22  }
 0x5e4   :  { %1367 = dma.done.wait [#allocation4], 768  }
 0x5e5   :  { %1368 = vsyncadd [#allocation4], 4294966528 }
 0x5e6   :  { %1036 = vsyncpa [#allocation3], 1 }
 0x5e7   :  { %1037 = vsyncpa [#allocation8], 1 }
 0x5e8   :  { %1038 = vsyncpa [#allocation11], 1 }
 0x5e9   :  { %1039 = vsyncpa [#allocation4], 1 }
 0x5ea   :  { %1040 = vsyncpa [#allocation5], 1 }

</bundles_post_ra>
